<compile_context>
chip_gen: v6e
topology: v6e:2x2x1
jax: 0.10.0
libtpu: 0.0.40
codegen_flags: <defaults>
</compile_context>

<pallas_src>
import math

import jax
import jax.numpy as jnp
from jax.experimental import pallas as pl
from jax.experimental.pallas import tpu as pltpu

# Small synthetic config (real ClinicalBERT: H=768, 12 heads, 6 layers, ...)
VOCAB = 100
BATCH = 2
SEQ = 8
HIDDEN = 32
N_HEADS = 4
HEAD_DIM = HIDDEN // N_HEADS
FFN = 64
N_LAYERS = 2
LN_EPS = 1e-12


# ---------------------------------------------------------------------------
# In-kernel helpers (traced inside the Pallas body)
# ---------------------------------------------------------------------------
def _layernorm(x, gamma, beta):
    mu = jnp.mean(x, axis=-1, keepdims=True)
    var = jnp.mean(jnp.square(x - mu), axis=-1, keepdims=True)
    return (x - mu) * jax.lax.rsqrt(var + LN_EPS) * gamma + beta


def _gelu(x):
    # TODO(synk): HF BERT uses exact erf-based GELU; tanh approximation here.
    return 0.5 * x * (1.0 + jnp.tanh(0.7978845608028654 * (x + 0.044715 * x * x * x)))


# ---------------------------------------------------------------------------
# Fused per-(batch, layer) kernel.  Grid = (B, L):
#   * batch axis "parallel"    -> independent (attention is per-sequence)
#   * layer axis "arbitrary"   -> weights streamed per layer, activation
#                                 carried in a VMEM scratch across layers.
# ---------------------------------------------------------------------------
def encoder_layer_kernel(x_ref, bias_ref, emb_g_ref, emb_b_ref,
                         wqkv_ref, bqkv_ref, wo_ref, bo_ref,
                         ln1g_ref, ln1b_ref, wf1_ref, bf1_ref,
                         wf2_ref, bf2_ref, ln2g_ref, ln2b_ref,
                         out_ref, act_ref):
    li = pl.program_id(1)

    # Layer 0: load this sequence's embeddings and apply the embedding LN.
    @pl.when(li == 0)
    def _():
        act_ref[...] = _layernorm(x_ref[0], emb_g_ref[...], emb_b_ref[...])

    x = act_ref[...]                         # (S, H) f32, resident across layers
    xb = x.astype(jnp.bfloat16)

    # --- Attention -----------------------------------------------------------
    # Fused QKV: one lane-dense (S,H)x(H,3H) matmul + one (1,3H) bias.
    # 1/sqrt(HEAD_DIM) is pre-folded into the Wq columns at init time.
    qkv = jnp.dot(xb, wqkv_ref[0], preferred_element_type=jnp.float32) + bqkv_ref[0]
    q = jnp.transpose(qkv[:, 0 * HIDDEN:1 * HIDDEN].reshape(SEQ, N_HEADS, HEAD_DIM),
                      (1, 0, 2))             # (NH, S, HD)
    k = jnp.transpose(qkv[:, 1 * HIDDEN:2 * HIDDEN].reshape(SEQ, N_HEADS, HEAD_DIM),
                      (1, 0, 2))
    v = jnp.transpose(qkv[:, 2 * HIDDEN:3 * HIDDEN].reshape(SEQ, N_HEADS, HEAD_DIM),
                      (1, 0, 2))

    # Scores / softmax / context: head-batched dot_generals, f32 softmax math.
    s = jnp.einsum("hqd,hkd->hqk", q.astype(jnp.bfloat16), k.astype(jnp.bfloat16),
                   preferred_element_type=jnp.float32)          # (NH, S, S)
    s = s + bias_ref[0][None]                # per-batch (1,1,S) key-padding bias
    m = jnp.max(s, axis=-1, keepdims=True)
    p = jnp.exp(s - m)
    p = p * pl.reciprocal(jnp.sum(p, axis=-1, keepdims=True), approx=True)
    ctx = jnp.einsum("hqk,hkd->hqd", p.astype(jnp.bfloat16), v.astype(jnp.bfloat16),
                     preferred_element_type=jnp.float32)        # (NH, S, HD)
    ctx = jnp.transpose(ctx, (1, 0, 2)).reshape(SEQ, HIDDEN)    # concat heads

    attn = jnp.dot(ctx.astype(jnp.bfloat16), wo_ref[0],
                   preferred_element_type=jnp.float32) + bo_ref[0]
    h1 = _layernorm(x + attn, ln1g_ref[0], ln1b_ref[0])

    # --- FFN -----------------------------------------------------------------
    ff = _gelu(jnp.dot(h1.astype(jnp.bfloat16), wf1_ref[0],
                       preferred_element_type=jnp.float32) + bf1_ref[0])
    ff = jnp.dot(ff.astype(jnp.bfloat16), wf2_ref[0],
                 preferred_element_type=jnp.float32) + bf2_ref[0]
    x_new = _layernorm(h1 + ff, ln2g_ref[0], ln2b_ref[0])
    act_ref[...] = x_new

    # Only the CLS row (target_token_idx = 0) ever leaves the kernel.
    @pl.when(li == pl.num_programs(1) - 1)
    def _():
        out_ref[...] = x_new[0:1, :].reshape(1, 1, HIDDEN)


# ---------------------------------------------------------------------------
# Wrapper: embedding gather (glue) + single fused pallas_call.
# ---------------------------------------------------------------------------
def text_encoder_forward(input_ids, attention_masks, params):
    """Returns last_hidden_state[:, 0, :]  (CLS embedding), shape (B, HIDDEN)."""
    B, S = input_ids.shape
    H, F, L = HIDDEN, FFN, N_LAYERS

    # Embedding gather + position embeddings (not the hot path).
    emb = jnp.take(params["word_emb"], input_ids, axis=0)          # (B, S, H)
    emb = (emb + params["pos_emb"][None, :S, :]).astype(jnp.float32)

    # Per-batch additive key-padding bias: 0 keep / -1e9 pad, shape (B, 1, S).
    bias = jnp.where(attention_masks > 0, 0.0, -1e9).astype(jnp.float32)
    bias = bias.reshape(B, 1, S)

    cls = pl.pallas_call(
        encoder_layer_kernel,
        out_shape=jax.ShapeDtypeStruct((B, 1, H), jnp.float32),
        grid_spec=pltpu.PrefetchScalarGridSpec(
            num_scalar_prefetch=0,
            grid=(B, L),
            in_specs=[
                pl.BlockSpec((1, S, H), lambda b, l: (b, 0, 0)),        # embeddings
                pl.BlockSpec((1, 1, S), lambda b, l: (b, 0, 0)),        # key bias
                pl.BlockSpec((1, H), lambda b, l: (0, 0)),              # emb_ln_g
                pl.BlockSpec((1, H), lambda b, l: (0, 0)),              # emb_ln_b
                pl.BlockSpec((1, H, 3 * H), lambda b, l: (l, 0, 0)),    # wqkv
                pl.BlockSpec((1, 1, 3 * H), lambda b, l: (l, 0, 0)),    # bqkv
                pl.BlockSpec((1, H, H), lambda b, l: (l, 0, 0)),        # wo
                pl.BlockSpec((1, 1, H), lambda b, l: (l, 0, 0)),        # bo
                pl.BlockSpec((1, 1, H), lambda b, l: (l, 0, 0)),        # ln1_g
                pl.BlockSpec((1, 1, H), lambda b, l: (l, 0, 0)),        # ln1_b
                pl.BlockSpec((1, H, F), lambda b, l: (l, 0, 0)),        # wf1
                pl.BlockSpec((1, 1, F), lambda b, l: (l, 0, 0)),        # bf1
                pl.BlockSpec((1, F, H), lambda b, l: (l, 0, 0)),        # wf2
                pl.BlockSpec((1, 1, H), lambda b, l: (l, 0, 0)),        # bf2
                pl.BlockSpec((1, 1, H), lambda b, l: (l, 0, 0)),        # ln2_g
                pl.BlockSpec((1, 1, H), lambda b, l: (l, 0, 0)),        # ln2_b
            ],
            out_specs=pl.BlockSpec((1, 1, H), lambda b, l: (b, 0, 0)),  # CLS rows
            scratch_shapes=[pltpu.VMEM((S, H), jnp.float32)],           # activation
        ),
        compiler_params=pltpu.CompilerParams(
            dimension_semantics=("parallel", "arbitrary"),
            vmem_limit_bytes=64 * 1024 * 1024),
    )(emb, bias,
      params["emb_ln_g"], params["emb_ln_b"],
      params["wqkv"], params["bqkv"], params["wo"], params["bo"],
      params["ln1_g"], params["ln1_b"],
      params["wf1"], params["bf1"], params["wf2"], params["bf2"],
      params["ln2_g"], params["ln2_b"])

    return cls.reshape(B, H)


# ---------------------------------------------------------------------------
# Deterministic parameter init (stacked per-layer; MXU weights in bf16).
# ---------------------------------------------------------------------------
def init_params(key):
    ks = jax.random.split(key, 8)
    L, H, F = N_LAYERS, HIDDEN, FFN

    def norm(k, shape):
        return jax.random.normal(k, shape, dtype=jnp.float32) * 0.02

    # Fused QKV weight (L, H, 3H); the 1/sqrt(head_dim) attention scale is
    # folded into the Wq columns so the kernel never multiplies the score tensor.
    wq = norm(ks[2], (L, H, H)) * (1.0 / math.sqrt(HEAD_DIM))
    wk = norm(ks[3], (L, H, H))
    wv = norm(ks[4], (L, H, H))
    wqkv = jnp.concatenate([wq, wk, wv], axis=-1).astype(jnp.bfloat16)

    return {
        "word_emb": norm(ks[0], (VOCAB, H)),
        "pos_emb": norm(ks[1], (SEQ, H)),
        "emb_ln_g": jnp.ones((1, H), jnp.float32),
        "emb_ln_b": jnp.zeros((1, H), jnp.float32),
        "wqkv": wqkv,
        "bqkv": jnp.zeros((L, 1, 3 * H), jnp.float32),
        "wo": norm(ks[5], (L, H, H)).astype(jnp.bfloat16),
        "bo": jnp.zeros((L, 1, H), jnp.float32),
        "ln1_g": jnp.ones((L, 1, H), jnp.float32),
        "ln1_b": jnp.zeros((L, 1, H), jnp.float32),
        "wf1": norm(ks[6], (L, H, F)).astype(jnp.bfloat16),
        "bf1": jnp.zeros((L, 1, F), jnp.float32),
        "wf2": norm(ks[7], (L, F, H)).astype(jnp.bfloat16),
        "bf2": jnp.zeros((L, 1, H), jnp.float32),
        "ln2_g": jnp.ones((L, 1, H), jnp.float32),
        "ln2_b": jnp.zeros((L, 1, H), jnp.float32),
    }


if __name__ == "__main__":
    key = jax.random.PRNGKey(0)
    pk, ik = jax.random.split(key)
    params = init_params(pk)

    input_ids = jax.random.randint(ik, (BATCH, SEQ), 0, VOCAB, dtype=jnp.int32)
    # Second sequence has two padding tokens at the end.
    attention_masks = jnp.ones((BATCH, SEQ), jnp.int32).at[1, 6:].set(0)

    fwd = jax.jit(text_encoder_forward)
    out = jax.block_until_ready(fwd(input_ids, attention_masks, params))

    assert out.shape == (BATCH, HIDDEN) and out.dtype == jnp.float32
    assert bool(jnp.all(jnp.isfinite(out)))
    print("KERNEL_OK")
</pallas_src>

<mosaic_0001>
module attributes {stable_mosaic.version = 11 : i64} {
  func.func @encoder_layer_kernel(%arg0: i32, %arg1: i32, %arg2: memref<1x8x32xf32, #tpu.memory_space<vmem>>, %arg3: memref<1x1x8xf32, #tpu.memory_space<vmem>>, %arg4: memref<1x32xf32, #tpu.memory_space<vmem>>, %arg5: memref<1x32xf32, #tpu.memory_space<vmem>>, %arg6: memref<1x32x96xbf16, #tpu.memory_space<vmem>>, %arg7: memref<1x1x96xf32, #tpu.memory_space<vmem>>, %arg8: memref<1x32x32xbf16, #tpu.memory_space<vmem>>, %arg9: memref<1x1x32xf32, #tpu.memory_space<vmem>>, %arg10: memref<1x1x32xf32, #tpu.memory_space<vmem>>, %arg11: memref<1x1x32xf32, #tpu.memory_space<vmem>>, %arg12: memref<1x32x64xbf16, #tpu.memory_space<vmem>>, %arg13: memref<1x1x64xf32, #tpu.memory_space<vmem>>, %arg14: memref<1x64x32xbf16, #tpu.memory_space<vmem>>, %arg15: memref<1x1x32xf32, #tpu.memory_space<vmem>>, %arg16: memref<1x1x32xf32, #tpu.memory_space<vmem>>, %arg17: memref<1x1x32xf32, #tpu.memory_space<vmem>>, %arg18: memref<1x1x32xf32, #tpu.memory_space<vmem>>, %arg19: memref<8x32xf32, #tpu.memory_space<vmem>>) attributes {dimension_semantics = [#tpu.dimension_semantics<parallel>, #tpu.dimension_semantics<arbitrary>], iteration_bounds = array<i64: 2, 2>, scalar_prefetch = 0 : i64, scratch_operands = 1 : i64, tpu.core_type = #tpu.core_type<tc>, window_params = [{transform_indices = @transform_0, window_bounds = array<i64: 1, 8, 32>}, {transform_indices = @transform_1, window_bounds = array<i64: 1, 1, 8>}, {pipeline_mode = #tpu.pipeline_mode<synchronous>, transform_indices = @transform_2, window_bounds = array<i64: 1, 32>}, {pipeline_mode = #tpu.pipeline_mode<synchronous>, transform_indices = @transform_3, window_bounds = array<i64: 1, 32>}, {transform_indices = @transform_4, window_bounds = array<i64: 1, 32, 96>}, {transform_indices = @transform_5, window_bounds = array<i64: 1, 1, 96>}, {transform_indices = @transform_6, window_bounds = array<i64: 1, 32, 32>}, {transform_indices = @transform_7, window_bounds = array<i64: 1, 1, 32>}, {transform_indices = @transform_8, window_bounds = array<i64: 1, 1, 32>}, {transform_indices = @transform_9, window_bounds = array<i64: 1, 1, 32>}, {transform_indices = @transform_10, window_bounds = array<i64: 1, 32, 64>}, {transform_indices = @transform_11, window_bounds = array<i64: 1, 1, 64>}, {transform_indices = @transform_12, window_bounds = array<i64: 1, 64, 32>}, {transform_indices = @transform_13, window_bounds = array<i64: 1, 1, 32>}, {transform_indices = @transform_14, window_bounds = array<i64: 1, 1, 32>}, {transform_indices = @transform_15, window_bounds = array<i64: 1, 1, 32>}, {transform_indices = @transform_16, window_bounds = array<i64: 1, 1, 32>}]} {
    %c0_i32 = arith.constant 0 : i32
    %0 = arith.cmpi eq, %arg1, %c0_i32 : i32
    %1 = arith.extui %0 : i1 to i32
    %c0_i32_0 = arith.constant 0 : i32
    %2 = arith.cmpi ne, %1, %c0_i32_0 : i32
    scf.if %2 {
      %c0_65 = arith.constant 0 : index
      %c0_66 = arith.constant 0 : index
      %c0_67 = arith.constant 0 : index
      %139 = vector.load %arg2[%c0_65, %c0_66, %c0_67] : memref<1x8x32xf32, #tpu.memory_space<vmem>>, vector<1x8x32xf32>
      %140 = vector.shape_cast %139 : vector<1x8x32xf32> to vector<8x32xf32>
      %c0_68 = arith.constant 0 : index
      %c0_69 = arith.constant 0 : index
      %141 = vector.load %arg4[%c0_68, %c0_69] : memref<1x32xf32, #tpu.memory_space<vmem>>, vector<1x32xf32>
      %c0_70 = arith.constant 0 : index
      %c0_71 = arith.constant 0 : index
      %142 = vector.load %arg5[%c0_70, %c0_71] : memref<1x32xf32, #tpu.memory_space<vmem>>, vector<1x32xf32>
      %cst_72 = arith.constant dense<0.000000e+00> : vector<8xf32>
      %143 = vector.multi_reduction <add>, %140, %cst_72 [1] : vector<8x32xf32> to vector<8xf32>
      %144 = vector.shape_cast %143 : vector<8xf32> to vector<8x1xf32>
      %cst_73 = arith.constant 3.200000e+01 : f32
      %145 = vector.broadcast %cst_73 : f32 to vector<8x1xf32>
      %146 = arith.divf %144, %145 : vector<8x1xf32>
      %147 = vector.broadcast %146 : vector<8x1xf32> to vector<8x32xf32>
      %148 = arith.subf %140, %147 : vector<8x32xf32>
      %149 = arith.mulf %148, %148 : vector<8x32xf32>
      %cst_74 = arith.constant dense<0.000000e+00> : vector<8xf32>
      %150 = vector.multi_reduction <add>, %149, %cst_74 [1] : vector<8x32xf32> to vector<8xf32>
      %151 = vector.shape_cast %150 : vector<8xf32> to vector<8x1xf32>
      %cst_75 = arith.constant 3.200000e+01 : f32
      %152 = vector.broadcast %cst_75 : f32 to vector<8x1xf32>
      %153 = arith.divf %151, %152 : vector<8x1xf32>
      %154 = vector.broadcast %146 : vector<8x1xf32> to vector<8x32xf32>
      %155 = arith.subf %140, %154 : vector<8x32xf32>
      %cst_76 = arith.constant 9.99999996E-13 : f32
      %156 = vector.broadcast %cst_76 : f32 to vector<8x1xf32>
      %157 = arith.addf %153, %156 : vector<8x1xf32>
      %158 = math.rsqrt %157 : vector<8x1xf32>
      %159 = vector.broadcast %158 : vector<8x1xf32> to vector<8x32xf32>
      %160 = arith.mulf %155, %159 : vector<8x32xf32>
      %161 = vector.broadcast %141 : vector<1x32xf32> to vector<8x32xf32>
      %162 = arith.mulf %160, %161 : vector<8x32xf32>
      %163 = vector.broadcast %142 : vector<1x32xf32> to vector<8x32xf32>
      %164 = arith.addf %162, %163 : vector<8x32xf32>
      %c0_77 = arith.constant 0 : index
      %c0_78 = arith.constant 0 : index
      %165 = vector.load %arg19[%c0_77, %c0_78] : memref<8x32xf32, #tpu.memory_space<vmem>>, vector<8x32xf32>
      tpu.vector_store %arg19[%c0_77, %c0_78], %164 {strides = array<i32>} : memref<8x32xf32, #tpu.memory_space<vmem>>, vector<8x32xf32>,
    } else {
    }
    %c0 = arith.constant 0 : index
    %c0_1 = arith.constant 0 : index
    %3 = vector.load %arg19[%c0, %c0_1] : memref<8x32xf32, #tpu.memory_space<vmem>>, vector<8x32xf32>
    %4 = arith.truncf %3 : vector<8x32xf32> to vector<8x32xbf16>
    %c0_2 = arith.constant 0 : index
    %c0_3 = arith.constant 0 : index
    %c0_4 = arith.constant 0 : index
    %5 = vector.load %arg6[%c0_2, %c0_3, %c0_4] : memref<1x32x96xbf16, #tpu.memory_space<vmem>>, vector<1x32x96xbf16>
    %6 = vector.shape_cast %5 : vector<1x32x96xbf16> to vector<32x96xbf16>
    %cst = arith.constant dense<0.000000e+00> : vector<8x96xf32>
    %7 = tpu.matmul %4, %6, %cst {dimension_numbers = #tpu.dot_dimension_numbers<[1], [0], [0], [1], [0, 0, 1, 1], [], []>} : vector<8x32xbf16>, vector<32x96xbf16>, vector<8x96xf32> -> vector<8x96xf32>
    %c0_5 = arith.constant 0 : index
    %c0_6 = arith.constant 0 : index
    %c0_7 = arith.constant 0 : index
    %8 = vector.load %arg7[%c0_5, %c0_6, %c0_7] : memref<1x1x96xf32, #tpu.memory_space<vmem>>, vector<1x1x96xf32>
    %9 = vector.shape_cast %8 : vector<1x1x96xf32> to vector<1x96xf32>
    %10 = vector.broadcast %9 : vector<1x96xf32> to vector<8x96xf32>
    %11 = arith.addf %7, %10 : vector<8x96xf32>
    %12 = vector.extract_strided_slice %11 {offsets = [0, 0], sizes = [8, 32], strides = [1, 1]} : vector<8x96xf32> to vector<8x32xf32>
    %13 = vector.shape_cast %12 : vector<8x32xf32> to vector<8x4x8xf32>
    %14 = tpu.transpose %13, [1, 0, 2] : vector<8x4x8xf32> -> vector<4x8x8xf32>
    %15 = vector.extract_strided_slice %11 {offsets = [0, 32], sizes = [8, 32], strides = [1, 1]} : vector<8x96xf32> to vector<8x32xf32>
    %16 = vector.shape_cast %15 : vector<8x32xf32> to vector<8x4x8xf32>
    %17 = tpu.transpose %16, [1, 0, 2] : vector<8x4x8xf32> -> vector<4x8x8xf32>
    %18 = vector.extract_strided_slice %11 {offsets = [0, 64], sizes = [8, 32], strides = [1, 1]} : vector<8x96xf32> to vector<8x32xf32>
    %19 = vector.shape_cast %18 : vector<8x32xf32> to vector<8x4x8xf32>
    %20 = tpu.transpose %19, [1, 0, 2] : vector<8x4x8xf32> -> vector<4x8x8xf32>
    %21 = arith.truncf %14 : vector<4x8x8xf32> to vector<4x8x8xbf16>
    %22 = arith.truncf %17 : vector<4x8x8xf32> to vector<4x8x8xbf16>
    "tpu.trace_start"() <{level = 10 : i32, message = "hqd,hkd->hqk"}> : () -> ()
    %cst_8 = arith.constant dense<0.000000e+00> : vector<4x8x8xf32>
    %23 = tpu.matmul %21, %22, %cst_8 {dimension_numbers = #tpu.dot_dimension_numbers<[2], [2], [1], [1], [0, 0, 0, 1, 1, 1], [0], [0]>} : vector<4x8x8xbf16>, vector<4x8x8xbf16>, vector<4x8x8xf32> -> vector<4x8x8xf32>
    "tpu.trace_stop"() : () -> ()
    %c0_9 = arith.constant 0 : index
    %c0_10 = arith.constant 0 : index
    %c0_11 = arith.constant 0 : index
    %24 = vector.load %arg3[%c0_9, %c0_10, %c0_11] : memref<1x1x8xf32, #tpu.memory_space<vmem>>, vector<1x1x8xf32>
    %25 = vector.shape_cast %24 : vector<1x1x8xf32> to vector<1x8xf32>
    %26 = vector.shape_cast %25 : vector<1x8xf32> to vector<1x1x8xf32>
    %27 = vector.broadcast %26 : vector<1x1x8xf32> to vector<4x8x8xf32>
    %28 = arith.addf %23, %27 : vector<4x8x8xf32>
    %cst_12 = arith.constant dense<0xFF800000> : vector<4x8xf32>
    %29 = vector.multi_reduction <maximumf>, %28, %cst_12 [2] : vector<4x8x8xf32> to vector<4x8xf32>
    %30 = vector.shape_cast %29 : vector<4x8xf32> to vector<4x8x1xf32>
    %31 = vector.broadcast %30 : vector<4x8x1xf32> to vector<4x8x8xf32>
    %32 = arith.subf %28, %31 : vector<4x8x8xf32>
    %33 = math.exp %32 : vector<4x8x8xf32>
    %cst_13 = arith.constant dense<0.000000e+00> : vector<4x8xf32>
    %34 = vector.multi_reduction <add>, %33, %cst_13 [2] : vector<4x8x8xf32> to vector<4x8xf32>
    %35 = vector.shape_cast %34 : vector<4x8xf32> to vector<4x8x1xf32>
    %36 = tpu.reciprocal %35 {approx = true} : vector<4x8x1xf32> -> vector<4x8x1xf32>
    %37 = vector.broadcast %36 : vector<4x8x1xf32> to vector<4x8x8xf32>
    %38 = arith.mulf %33, %37 : vector<4x8x8xf32>
    %39 = arith.truncf %38 : vector<4x8x8xf32> to vector<4x8x8xbf16>
    %40 = arith.truncf %20 : vector<4x8x8xf32> to vector<4x8x8xbf16>
    "tpu.trace_start"() <{level = 10 : i32, message = "hqk,hkd->hqd"}> : () -> ()
    %cst_14 = arith.constant dense<0.000000e+00> : vector<4x8x8xf32>
    %41 = tpu.matmul %39, %40, %cst_14 {dimension_numbers = #tpu.dot_dimension_numbers<[2], [1], [1], [2], [0, 0, 0, 1, 1, 2], [0], [0]>} : vector<4x8x8xbf16>, vector<4x8x8xbf16>, vector<4x8x8xf32> -> vector<4x8x8xf32>
    "tpu.trace_stop"() : () -> ()
    %42 = tpu.transpose %41, [1, 0, 2] : vector<4x8x8xf32> -> vector<8x4x8xf32>
    %43 = vector.shape_cast %42 : vector<8x4x8xf32> to vector<8x32xf32>
    %44 = arith.truncf %43 : vector<8x32xf32> to vector<8x32xbf16>
    %c0_15 = arith.constant 0 : index
    %c0_16 = arith.constant 0 : index
    %c0_17 = arith.constant 0 : index
    %45 = vector.load %arg8[%c0_15, %c0_16, %c0_17] : memref<1x32x32xbf16, #tpu.memory_space<vmem>>, vector<1x32x32xbf16>
    %46 = vector.shape_cast %45 : vector<1x32x32xbf16> to vector<32x32xbf16>
    %cst_18 = arith.constant dense<0.000000e+00> : vector<8x32xf32>
    %47 = tpu.matmul %44, %46, %cst_18 {dimension_numbers = #tpu.dot_dimension_numbers<[1], [0], [0], [1], [0, 0, 1, 1], [], []>} : vector<8x32xbf16>, vector<32x32xbf16>, vector<8x32xf32> -> vector<8x32xf32>
    %c0_19 = arith.constant 0 : index
    %c0_20 = arith.constant 0 : index
    %c0_21 = arith.constant 0 : index
    %48 = vector.load %arg9[%c0_19, %c0_20, %c0_21] : memref<1x1x32xf32, #tpu.memory_space<vmem>>, vector<1x1x32xf32>
    %49 = vector.shape_cast %48 : vector<1x1x32xf32> to vector<1x32xf32>
    %50 = vector.broadcast %49 : vector<1x32xf32> to vector<8x32xf32>
    %51 = arith.addf %47, %50 : vector<8x32xf32>
    %52 = arith.addf %3, %51 : vector<8x32xf32>
    %c0_22 = arith.constant 0 : index
    %c0_23 = arith.constant 0 : index
    %c0_24 = arith.constant 0 : index
    %53 = vector.load %arg10[%c0_22, %c0_23, %c0_24] : memref<1x1x32xf32, #tpu.memory_space<vmem>>, vector<1x1x32xf32>
    %54 = vector.shape_cast %53 : vector<1x1x32xf32> to vector<1x32xf32>
    %c0_25 = arith.constant 0 : index
    %c0_26 = arith.constant 0 : index
    %c0_27 = arith.constant 0 : index
    %55 = vector.load %arg11[%c0_25, %c0_26, %c0_27] : memref<1x1x32xf32, #tpu.memory_space<vmem>>, vector<1x1x32xf32>
    %56 = vector.shape_cast %55 : vector<1x1x32xf32> to vector<1x32xf32>
    %cst_28 = arith.constant dense<0.000000e+00> : vector<8xf32>
    %57 = vector.multi_reduction <add>, %52, %cst_28 [1] : vector<8x32xf32> to vector<8xf32>
    %58 = vector.shape_cast %57 : vector<8xf32> to vector<8x1xf32>
    %cst_29 = arith.constant 3.200000e+01 : f32
    %59 = vector.broadcast %cst_29 : f32 to vector<8x1xf32>
    %60 = arith.divf %58, %59 : vector<8x1xf32>
    %61 = vector.broadcast %60 : vector<8x1xf32> to vector<8x32xf32>
    %62 = arith.subf %52, %61 : vector<8x32xf32>
    %63 = arith.mulf %62, %62 : vector<8x32xf32>
    %cst_30 = arith.constant dense<0.000000e+00> : vector<8xf32>
    %64 = vector.multi_reduction <add>, %63, %cst_30 [1] : vector<8x32xf32> to vector<8xf32>
    %65 = vector.shape_cast %64 : vector<8xf32> to vector<8x1xf32>
    %cst_31 = arith.constant 3.200000e+01 : f32
    %66 = vector.broadcast %cst_31 : f32 to vector<8x1xf32>
    %67 = arith.divf %65, %66 : vector<8x1xf32>
    %68 = vector.broadcast %60 : vector<8x1xf32> to vector<8x32xf32>
    %69 = arith.subf %52, %68 : vector<8x32xf32>
    %cst_32 = arith.constant 9.99999996E-13 : f32
    %70 = vector.broadcast %cst_32 : f32 to vector<8x1xf32>
    %71 = arith.addf %67, %70 : vector<8x1xf32>
    %72 = math.rsqrt %71 : vector<8x1xf32>
    %73 = vector.broadcast %72 : vector<8x1xf32> to vector<8x32xf32>
    %74 = arith.mulf %69, %73 : vector<8x32xf32>
    %75 = vector.broadcast %54 : vector<1x32xf32> to vector<8x32xf32>
    %76 = arith.mulf %74, %75 : vector<8x32xf32>
    %77 = vector.broadcast %56 : vector<1x32xf32> to vector<8x32xf32>
    %78 = arith.addf %76, %77 : vector<8x32xf32>
    %79 = arith.truncf %78 : vector<8x32xf32> to vector<8x32xbf16>
    %c0_33 = arith.constant 0 : index
    %c0_34 = arith.constant 0 : index
    %c0_35 = arith.constant 0 : index
    %80 = vector.load %arg12[%c0_33, %c0_34, %c0_35] : memref<1x32x64xbf16, #tpu.memory_space<vmem>>, vector<1x32x64xbf16>
    %81 = vector.shape_cast %80 : vector<1x32x64xbf16> to vector<32x64xbf16>
    %cst_36 = arith.constant dense<0.000000e+00> : vector<8x64xf32>
    %82 = tpu.matmul %79, %81, %cst_36 {dimension_numbers = #tpu.dot_dimension_numbers<[1], [0], [0], [1], [0, 0, 1, 1], [], []>} : vector<8x32xbf16>, vector<32x64xbf16>, vector<8x64xf32> -> vector<8x64xf32>
    %c0_37 = arith.constant 0 : index
    %c0_38 = arith.constant 0 : index
    %c0_39 = arith.constant 0 : index
    %83 = vector.load %arg13[%c0_37, %c0_38, %c0_39] : memref<1x1x64xf32, #tpu.memory_space<vmem>>, vector<1x1x64xf32>
    %84 = vector.shape_cast %83 : vector<1x1x64xf32> to vector<1x64xf32>
    %85 = vector.broadcast %84 : vector<1x64xf32> to vector<8x64xf32>
    %86 = arith.addf %82, %85 : vector<8x64xf32>
    %cst_40 = arith.constant 5.000000e-01 : f32
    %87 = vector.broadcast %cst_40 : f32 to vector<8x64xf32>
    %88 = arith.mulf %87, %86 : vector<8x64xf32>
    %cst_41 = arith.constant 4.471500e-02 : f32
    %89 = vector.broadcast %cst_41 : f32 to vector<8x64xf32>
    %90 = arith.mulf %89, %86 : vector<8x64xf32>
    %91 = arith.mulf %90, %86 : vector<8x64xf32>
    %92 = arith.mulf %91, %86 : vector<8x64xf32>
    %93 = arith.addf %86, %92 : vector<8x64xf32>
    %cst_42 = arith.constant 0.797884583 : f32
    %94 = vector.broadcast %cst_42 : f32 to vector<8x64xf32>
    %95 = arith.mulf %94, %93 : vector<8x64xf32>
    %96 = math.tanh %95 : vector<8x64xf32>
    %cst_43 = arith.constant 1.000000e+00 : f32
    %97 = vector.broadcast %cst_43 : f32 to vector<8x64xf32>
    %98 = arith.addf %97, %96 : vector<8x64xf32>
    %99 = arith.mulf %88, %98 : vector<8x64xf32>
    %100 = arith.truncf %99 : vector<8x64xf32> to vector<8x64xbf16>
    %c0_44 = arith.constant 0 : index
    %c0_45 = arith.constant 0 : index
    %c0_46 = arith.constant 0 : index
    %101 = vector.load %arg14[%c0_44, %c0_45, %c0_46] : memref<1x64x32xbf16, #tpu.memory_space<vmem>>, vector<1x64x32xbf16>
    %102 = vector.shape_cast %101 : vector<1x64x32xbf16> to vector<64x32xbf16>
    %cst_47 = arith.constant dense<0.000000e+00> : vector<8x32xf32>
    %103 = tpu.matmul %100, %102, %cst_47 {dimension_numbers = #tpu.dot_dimension_numbers<[1], [0], [0], [1], [0, 0, 1, 1], [], []>} : vector<8x64xbf16>, vector<64x32xbf16>, vector<8x32xf32> -> vector<8x32xf32>
    %c0_48 = arith.constant 0 : index
    %c0_49 = arith.constant 0 : index
    %c0_50 = arith.constant 0 : index
    %104 = vector.load %arg15[%c0_48, %c0_49, %c0_50] : memref<1x1x32xf32, #tpu.memory_space<vmem>>, vector<1x1x32xf32>
    %105 = vector.shape_cast %104 : vector<1x1x32xf32> to vector<1x32xf32>
    %106 = vector.broadcast %105 : vector<1x32xf32> to vector<8x32xf32>
    %107 = arith.addf %103, %106 : vector<8x32xf32>
    %108 = arith.addf %78, %107 : vector<8x32xf32>
    %c0_51 = arith.constant 0 : index
    %c0_52 = arith.constant 0 : index
    %c0_53 = arith.constant 0 : index
    %109 = vector.load %arg16[%c0_51, %c0_52, %c0_53] : memref<1x1x32xf32, #tpu.memory_space<vmem>>, vector<1x1x32xf32>
    %110 = vector.shape_cast %109 : vector<1x1x32xf32> to vector<1x32xf32>
    %c0_54 = arith.constant 0 : index
    %c0_55 = arith.constant 0 : index
    %c0_56 = arith.constant 0 : index
    %111 = vector.load %arg17[%c0_54, %c0_55, %c0_56] : memref<1x1x32xf32, #tpu.memory_space<vmem>>, vector<1x1x32xf32>
    %112 = vector.shape_cast %111 : vector<1x1x32xf32> to vector<1x32xf32>
    %cst_57 = arith.constant dense<0.000000e+00> : vector<8xf32>
    %113 = vector.multi_reduction <add>, %108, %cst_57 [1] : vector<8x32xf32> to vector<8xf32>
    %114 = vector.shape_cast %113 : vector<8xf32> to vector<8x1xf32>
    %cst_58 = arith.constant 3.200000e+01 : f32
    %115 = vector.broadcast %cst_58 : f32 to vector<8x1xf32>
    %116 = arith.divf %114, %115 : vector<8x1xf32>
    %117 = vector.broadcast %116 : vector<8x1xf32> to vector<8x32xf32>
    %118 = arith.subf %108, %117 : vector<8x32xf32>
    %119 = arith.mulf %118, %118 : vector<8x32xf32>
    %cst_59 = arith.constant dense<0.000000e+00> : vector<8xf32>
    %120 = vector.multi_reduction <add>, %119, %cst_59 [1] : vector<8x32xf32> to vector<8xf32>
    %121 = vector.shape_cast %120 : vector<8xf32> to vector<8x1xf32>
    %cst_60 = arith.constant 3.200000e+01 : f32
    %122 = vector.broadcast %cst_60 : f32 to vector<8x1xf32>
    %123 = arith.divf %121, %122 : vector<8x1xf32>
    %124 = vector.broadcast %116 : vector<8x1xf32> to vector<8x32xf32>
    %125 = arith.subf %108, %124 : vector<8x32xf32>
    %cst_61 = arith.constant 9.99999996E-13 : f32
    %126 = vector.broadcast %cst_61 : f32 to vector<8x1xf32>
    %127 = arith.addf %123, %126 : vector<8x1xf32>
    %128 = math.rsqrt %127 : vector<8x1xf32>
    %129 = vector.broadcast %128 : vector<8x1xf32> to vector<8x32xf32>
    %130 = arith.mulf %125, %129 : vector<8x32xf32>
    %131 = vector.broadcast %110 : vector<1x32xf32> to vector<8x32xf32>
    %132 = arith.mulf %130, %131 : vector<8x32xf32>
    %133 = vector.broadcast %112 : vector<1x32xf32> to vector<8x32xf32>
    %134 = arith.addf %132, %133 : vector<8x32xf32>
    %c0_62 = arith.constant 0 : index
    %c0_63 = arith.constant 0 : index
    %135 = vector.load %arg19[%c0_62, %c0_63] : memref<8x32xf32, #tpu.memory_space<vmem>>, vector<8x32xf32>
    tpu.vector_store %arg19[%c0_62, %c0_63], %134 {strides = array<i32>} : memref<8x32xf32, #tpu.memory_space<vmem>>, vector<8x32xf32>,
    %c1_i32 = arith.constant 1 : i32
    %136 = arith.cmpi eq, %arg1, %c1_i32 : i32
    %137 = arith.extui %136 : i1 to i32
    %c0_i32_64 = arith.constant 0 : i32
    %138 = arith.cmpi ne, %137, %c0_i32_64 : i32
    scf.if %138 {
      %139 = vector.extract_strided_slice %134 {offsets = [0, 0], sizes = [1, 32], strides = [1, 1]} : vector<8x32xf32> to vector<1x32xf32>
      %140 = vector.shape_cast %139 : vector<1x32xf32> to vector<1x1x32xf32>
      %c0_65 = arith.constant 0 : index
      %c0_66 = arith.constant 0 : index
      %c0_67 = arith.constant 0 : index
      %141 = vector.load %arg18[%c0_65, %c0_66, %c0_67] : memref<1x1x32xf32, #tpu.memory_space<vmem>>, vector<1x1x32xf32>
      tpu.vector_store %arg18[%c0_65, %c0_66, %c0_67], %140 {strides = array<i32>} : memref<1x1x32xf32, #tpu.memory_space<vmem>>, vector<1x1x32xf32>,
    } else {
    }
    return
  }
  func.func @transform_0(%arg0: i32, %arg1: i32) -> (i32, i32, i32) {
    %c0_i32 = arith.constant 0 : i32
    %c0_i32_0 = arith.constant 0 : i32
    %c0_i32_1 = arith.constant 0 : i32
    return %arg0, %c0_i32, %c0_i32_0 : i32, i32, i32
  }
  func.func @transform_1(%arg0: i32, %arg1: i32) -> (i32, i32, i32) {
    %c0_i32 = arith.constant 0 : i32
    %c0_i32_0 = arith.constant 0 : i32
    %c0_i32_1 = arith.constant 0 : i32
    return %arg0, %c0_i32, %c0_i32_0 : i32, i32, i32
  }
  func.func @transform_2(%arg0: i32, %arg1: i32) -> (i32, i32) {
    %c0_i32 = arith.constant 0 : i32
    %c0_i32_0 = arith.constant 0 : i32
    %c0_i32_1 = arith.constant 0 : i32
    return %c0_i32, %c0_i32_0 : i32, i32
  }
  func.func @transform_3(%arg0: i32, %arg1: i32) -> (i32, i32) {
    %c0_i32 = arith.constant 0 : i32
    %c0_i32_0 = arith.constant 0 : i32
    %c0_i32_1 = arith.constant 0 : i32
    return %c0_i32, %c0_i32_0 : i32, i32
  }
  func.func @transform_4(%arg0: i32, %arg1: i32) -> (i32, i32, i32) {
    %c0_i32 = arith.constant 0 : i32
    %c0_i32_0 = arith.constant 0 : i32
    %c0_i32_1 = arith.constant 0 : i32
    return %arg1, %c0_i32, %c0_i32_0 : i32, i32, i32
  }
  func.func @transform_5(%arg0: i32, %arg1: i32) -> (i32, i32, i32) {
    %c0_i32 = arith.constant 0 : i32
    %c0_i32_0 = arith.constant 0 : i32
    %c0_i32_1 = arith.constant 0 : i32
    return %arg1, %c0_i32, %c0_i32_0 : i32, i32, i32
  }
  func.func @transform_6(%arg0: i32, %arg1: i32) -> (i32, i32, i32) {
    %c0_i32 = arith.constant 0 : i32
    %c0_i32_0 = arith.constant 0 : i32
    %c0_i32_1 = arith.constant 0 : i32
    return %arg1, %c0_i32, %c0_i32_0 : i32, i32, i32
  }
  func.func @transform_7(%arg0: i32, %arg1: i32) -> (i32, i32, i32) {
    %c0_i32 = arith.constant 0 : i32
    %c0_i32_0 = arith.constant 0 : i32
    %c0_i32_1 = arith.constant 0 : i32
    return %arg1, %c0_i32, %c0_i32_0 : i32, i32, i32
  }
  func.func @transform_8(%arg0: i32, %arg1: i32) -> (i32, i32, i32) {
    %c0_i32 = arith.constant 0 : i32
    %c0_i32_0 = arith.constant 0 : i32
    %c0_i32_1 = arith.constant 0 : i32
    return %arg1, %c0_i32, %c0_i32_0 : i32, i32, i32
  }
  func.func @transform_9(%arg0: i32, %arg1: i32) -> (i32, i32, i32) {
    %c0_i32 = arith.constant 0 : i32
    %c0_i32_0 = arith.constant 0 : i32
    %c0_i32_1 = arith.constant 0 : i32
    return %arg1, %c0_i32, %c0_i32_0 : i32, i32, i32
  }
  func.func @transform_10(%arg0: i32, %arg1: i32) -> (i32, i32, i32) {
    %c0_i32 = arith.constant 0 : i32
    %c0_i32_0 = arith.constant 0 : i32
    %c0_i32_1 = arith.constant 0 : i32
    return %arg1, %c0_i32, %c0_i32_0 : i32, i32, i32
  }
  func.func @transform_11(%arg0: i32, %arg1: i32) -> (i32, i32, i32) {
    %c0_i32 = arith.constant 0 : i32
    %c0_i32_0 = arith.constant 0 : i32
    %c0_i32_1 = arith.constant 0 : i32
    return %arg1, %c0_i32, %c0_i32_0 : i32, i32, i32
  }
  func.func @transform_12(%arg0: i32, %arg1: i32) -> (i32, i32, i32) {
    %c0_i32 = arith.constant 0 : i32
    %c0_i32_0 = arith.constant 0 : i32
    %c0_i32_1 = arith.constant 0 : i32
    return %arg1, %c0_i32, %c0_i32_0 : i32, i32, i32
  }
  func.func @transform_13(%arg0: i32, %arg1: i32) -> (i32, i32, i32) {
    %c0_i32 = arith.constant 0 : i32
    %c0_i32_0 = arith.constant 0 : i32
    %c0_i32_1 = arith.constant 0 : i32
    return %arg1, %c0_i32, %c0_i32_0 : i32, i32, i32
  }
  func.func @transform_14(%arg0: i32, %arg1: i32) -> (i32, i32, i32) {
    %c0_i32 = arith.constant 0 : i32
    %c0_i32_0 = arith.constant 0 : i32
    %c0_i32_1 = arith.constant 0 : i32
    return %arg1, %c0_i32, %c0_i32_0 : i32, i32, i32
  }
  func.func @transform_15(%arg0: i32, %arg1: i32) -> (i32, i32, i32) {
    %c0_i32 = arith.constant 0 : i32
    %c0_i32_0 = arith.constant 0 : i32
    %c0_i32_1 = arith.constant 0 : i32
    return %arg1, %c0_i32, %c0_i32_0 : i32, i32, i32
  }
  func.func @transform_16(%arg0: i32, %arg1: i32) -> (i32, i32, i32) {
    %c0_i32 = arith.constant 0 : i32
    %c0_i32_0 = arith.constant 0 : i32
    %c0_i32_1 = arith.constant 0 : i32
    return %arg0, %c0_i32, %c0_i32_0 : i32, i32, i32
  }
}

</mosaic_0001>

<bundles_post_ra>
// kernel: text_encoder_forward.1
= control target key start
LH: loop header
LB: loop body
LE: loop exit
PB: predicated region body
PF: predicated region fallthrough
CT: control target
= control target key end

     0   :  { %s3312_s0 = inlined_call_operand.vmem [shape: f32[2,8,32], index: 0, kind: input, shape index: {}]   ;;  %s3313_s1 = inlined_call_operand.vmem [shape: f32[2,1,8], index: 1, kind: input, shape index: {}]   ;;  %s3314_s2 = inlined_call_operand.vmem [shape: f32[1,32], index: 2, kind: input, shape index: {}]   ;;  %s3315_s3 = inlined_call_operand.vmem [shape: f32[1,32], index: 3, kind: input, shape index: {}]   ;;  %s3316_s4 = inlined_call_operand.vmem [shape: bf16[2,32,96], index: 4, kind: input, shape index: {}]   ;;  %s3317_s5 = inlined_call_operand.vmem [shape: f32[2,1,96], index: 5, kind: input, shape index: {}]   ;;  %s3318_s6 = inlined_call_operand.vmem [shape: bf16[2,32,32], index: 6, kind: input, shape index: {}]   ;;  %s3319_s7 = inlined_call_operand.vmem [shape: f32[2,1,32], index: 7, kind: input, shape index: {}]   ;;  %s3320_s8 = inlined_call_operand.vmem [shape: f32[2,1,32], index: 8, kind: input, shape index: {}]   ;;  %s3321_s9 = inlined_call_operand.vmem [shape: f32[2,1,32], index: 9, kind: input, shape index: {}]   ;;  %s3322_s10 = inlined_call_operand.vmem [shape: bf16[2,32,64], index: 10, kind: input, shape index: {}]   ;;  %s3323_s11 = inlined_call_operand.vmem [shape: f32[2,1,64], index: 11, kind: input, shape index: {}]   ;;  %s3324_s12 = inlined_call_operand.vmem [shape: bf16[2,64,32], index: 12, kind: input, shape index: {}]   ;;  %s3325_s13 = inlined_call_operand.vmem [shape: f32[2,1,32], index: 13, kind: input, shape index: {}]   ;;  %s3326_s14 = inlined_call_operand.vmem [shape: f32[2,1,32], index: 14, kind: input, shape index: {}]   ;;  %s3327_s15 = inlined_call_operand.vmem [shape: f32[2,1,32], index: 15, kind: input, shape index: {}]   ;;  %s3328_s16 = inlined_call_operand.hbm [shape: f32[2,1,32], index: 16, kind: output, shape index: {}]  }
   0x1   :  { %3342 = sst [smem:[#allocation18_spill]] %s3312_s0 }
   0x2   :  { %3343 = sst [smem:[#allocation19_spill]] %s3313_s1 }
   0x3   :  { %3344 = sst [smem:[#allocation20_spill]] %s3314_s2 }
   0x4   :  { %3345 = sst [smem:[#allocation21_spill]] %s3315_s3 }
   0x5   :  { %3346 = sst [smem:[#allocation22_spill]] %s3316_s4 }
   0x6   :  { %3347 = sst [smem:[#allocation23_spill]] %s3318_s6 }
   0x7   :  { %3348 = sst [smem:[#allocation24_spill]] %s3321_s9 }
   0x8   :  { %3349 = sst [smem:[#allocation25_spill]] %s3322_s10 }
   0x9   :  { %3350 = sst [smem:[#allocation26_spill]] %s3326_s14 }
   0xa   :  { %3351 = sst [smem:[#allocation27_spill]] %s3327_s15 }
   0xb   :  { %3352 = sst [smem:[#allocation28_spill]] %s3328_s16 }
   0xc   :  { %21 = vsyncpa [#allocation4], 0 }
   0xd   :  { %23 = vsyncpa [#allocation4 + $0x1], 0  ;;  %s2863_s21 = smov 0   ;;  %s2865_s22 = smov 0  }
   0xe   :  { %s2867_s23 = smov 0   ;;  %s2869_s24 = smov 0  }
   0xf   :  { %s2871_s25 = smov 0   ;;  %s2873_s26 = smov 0  }
  0x10   :  { %s2875_s27 = smov 0   ;;  %s2877_s28 = smov 0  }
  0x11 LB: > { %3353 = sst [smem:[#allocation6_spill]] %s2735_s21  ;;  %s2376_s29 = sadd.s32 4294967295, %s2763_s28   ;;  %s2763_s28 = sphi %s2877_s28, %s29_s28   ;;  %s2759_s27 = sphi %s2875_s27, %s3402_s27   ;;  %s2755_s26 = sphi %s2873_s26, %s3401_s26   ;;  %s2751_s25 = sphi %s2871_s25, %s3400_s25   ;;  %s2747_s24 = sphi %s2869_s24, %s3399_s24   ;;  %s2743_s23 = sphi %s2867_s23, %s3398_s23   ;;  %s2739_s22 = sphi %s2865_s22, %s3404_s22   ;;  %s2735_s21 = sphi %s2863_s21, %s3403_s21  }
  0x12   : > { %3354 = sst [smem:[#allocation7_spill]] %s2743_s23  ;;  %s2377_s30 = sadd.s32 4294967294, %s2763_s28  }
  0x13   : > { %3355 = sst [smem:[#allocation8_spill]] %s2747_s24  ;;  %s38_s0 = sadd.s32 1, %s2755_s26 }
  0x14   : > { %3356 = sst [smem:[#allocation9_spill]] %s2751_s25  ;;  %p39_p0 = scmp.ge.s32.totalorder %s38_s0, 2 }
  0x15   : > { %3357 = sst [smem:[#allocation10_spill]] %s2755_s26  ;;  %s41_s17 = sadd.s32 1, %s2759_s27 }
  0x16   : > { %3358 = sst [smem:[#allocation11_spill]] %s2759_s27  ;;  %p464_p1 = scmp.ne.s32.totalorder %s2743_s23, %s2739_s22 }
  0x17   : > { %3359 = sst [smem:[#allocation12_spill]] %s2763_s28  ;;  %p465_p2 = scmp.eq.s32.totalorder %s2376_s29, 3 }
  0x18   : > { %s3406_s0 = smov (%p39_p0, %s38_s0), 0  ;;  %s3408_s17 = smov (!%p39_p0, %s41_s17), %s2759_s27 }
  0x19   : > { %3360 = sst [smem:[#allocation13_spill]] %s3406_s0  ;;  %p2912_p3 = por %p465_p2, %p464_p1 }
  0x1a   : > { %p470_p4 = scmp.ne.s32.totalorder %s2739_s22, %s2735_s21  ;;  %p43_p5 = scmp.ge.s32.totalorder %s3408_s17, 2 }
  0x1b   : > { %s3361_s18 = scalar_select %p2912_p3, 1, 0 }
  0x1c   : > { %p471_p6 = scmp.eq.s32.totalorder %s2377_s30, 3  ;;  %p2380_p7 = scmp.ge.s32.totalorder %s2763_s28, 1 }
  0x1d   : > { %3362 = sst [smem:[#allocation14_spill]] %s3361_s18  ;;  %p588_p8 = scmp.lt.s32.totalorder %s2763_s28, 5 }
  0x1e   : > { %s3410_s17 = smov (%p43_p5, %s3408_s17), 0  ;;  %p2922_p9 = por %p471_p6, %p470_p4 }
  0x1f   : > { %3363 = sst [smem:[#allocation15_spill]] %s3410_s17  ;;  %p589_p10 = pnand %p2380_p7, %p588_p8 }
  0x20   : > { %s3364_s19 = scalar_select %p2922_p9, 1, 0 }
  0x21   : > { %s451_s20 = ssub.s32 %s2759_s27, %s3410_s17  ;;  %s454_s29 = sadd.s32 1, %s2743_s23 }
  0x22   : > { %3365 = sst [smem:[#allocation16_spill]] %s3364_s19  ;;  %p452_p11 = scmp.eq.s32.totalorder %s451_s20, 0 }
  0x23   : > { %592 = sbr.rel (%p589_p10) target bundleno = 2997 (0xbb5), region = 84  ;;  %p683_p12 = scmp.lt.s32.totalorder (!%p589_p10), %s2751_s25, 1 }
  0x24   : > { %s2930_s0 = scalar_select %p452_p11, %s2743_s23, %s454_s29  }
  0x25   : > { %p690_p13 = scmp.lt.s32.totalorder (!%p589_p10), %s2747_s24, 1  ;;  %s3368_s23 = sld [smem:[#allocation18_spill]] (!%p589_p10) }
  0x26   : > { %3366 = sst [smem:[#allocation17_spill]] %s2930_s0  ;;  %s3375_s14 = sand.u32 (!%p589_p10), 1, %s2739_s22  }
  0x27   : > { %s3369_s4 = sld [smem:[#allocation22_spill]] (!%p589_p10)  ;;  %s3005_s15 = scalar_lea.vmem (!%p589_p10), [#allocation3], %s3375_s14 }
  0x28   : > { %s2936_s26 = scalar_select %p683_p12, %s2751_s25, 1 }
  0x29   : > { %s2939_s19 = scalar_select %p690_p13, %s2747_s24, 1 }
  0x2a   : > { %s2381_s20 = sshll.u32 %s2936_s26, 3  ;;  %s3370_s6 = sld [smem:[#allocation23_spill]] }
  0x2b   : > { %s686_s21 = scalar_lea.vmem %s3368_s23, %s2381_s20  ;;  %s2436_s28 = sshll.u32 %s2939_s19, 4 }
  0x2c   : > { %s3372_s10 = sld [smem:[#allocation25_spill]]  ;;  %s727_s27 = scalar_lea.vmem %s3325_s13, %s2939_s19 }
  0x2d   : > { %s2953_s25 = scalar_lea.vmem %s3369_s4, %s2436_s28  ;;  %s3373_s4 = sld [smem:[#allocation26_spill]] }
  0x2e   : > { %s3376_s24 = sld [smem:[#allocation8_spill]] }
  0x30   : > { %s2962_s30 = scalar_lea.vmem %s3370_s6, %s2436_s28  ;;  %s2439_s6 = sshll.u32 %s2939_s19, 5 }
  0x31   : > { %s2993_s20 = scalar_lea.vmem %s3324_s12, %s2439_s6 }
  0x32   : > { %s2979_s3 = scalar_lea.vmem %s3372_s10, %s2436_s28  ;;  %s3374_s10 = sld [smem:[#allocation27_spill]] }
  0x33   : > { %s730_s1 = scalar_lea.vmem %s3373_s4, %s2939_s19 }
  0x34   : > { %p2390_p0 = scmp.ne.s32.totalorder %s3376_s24, 0 }
  0x35   : > { %s3378_s17 = sld [smem:[#allocation21_spill]] (!%p2390_p0) }
  0x36   : > { %738 = sbr.rel (%p2390_p0) target bundleno = 369 (0x171), region = 88 }
  0x38   : > { %s733_s9 = scalar_lea.vmem %s3374_s10, %s2939_s19  ;;  %s3377_s10 = sld [smem:[#allocation20_spill]] (!%p2390_p0) }
  0x3b   : > { %v739_v0 = vld [vmem:[%s686_s21] sm:$0xff]  ;;  %vm742_vm0 = vcmask 261120  }
  0x3c   : > { %v743_v1 = vsel %vm742_vm0, %v739_v0, 0.0  ;;  %v2392_v13 = vld [vmem:[%s3378_s17] ss:$0 sm:$0xff] }
  0x3d   : > { %744 = vadd.xlane.f32.xlu0 %v743_v1 }
  0x3e   : > { %v2391_v11 = vld [vmem:[%s3377_s10] ss:$0 sm:$0xff] }
  0xc6   : > { %v745_v2 = vpop.xlane.xlu0 %744 }
  0xc7   : > { %v747_v3 = vmul.f32 0.03125, %v745_v2 }
  0xc9   : > { %v748_v4 = vsub.f32 %v739_v0, %v747_v3 }
  0xcb   : > { %v749_v5 = vmul.f32 %v748_v4, %v748_v4 }
  0xcd   : > { %v750_v6 = vsel %vm742_vm0, %v749_v5, 0.0 }
  0xce   : > { %751 = vadd.xlane.f32.xlu0 %v750_v6 }
 0x157   : > { %v752_v7 = vpop.xlane.xlu0 %751 }
 0x158   : > { %v753_v8 = vmul.f32 0.03125, %v752_v7 }
 0x15a   : > { %v754_v9 = vadd.f32 1e-12, %v753_v8 }
 0x15c   : > { %2637 = vrsqrt.f32 %v754_v9 }
 0x169   : > { %v2638_v10 = vpop.eup %2637 }
 0x16a   : > { %v756_v12 = vmul.f32 %v2638_v10, %v748_v4 }
 0x16c   : > { %v763_v14 = vmul.f32 %v2391_v11, %v756_v12 }
 0x16e   : > { %v770_v15 = vadd.f32 %v2392_v13, %v763_v14 }
 0x170   : > { %771 = vst.msk [vmem:[#allocation2] sm:$0xff] %vm742_vm0, %v770_v15 }
 0x171 PF: > { %v2639_v16 = vld [vmem:[%s2953_s25 + $0x8] sm:$0xff]   ;;  %v2765_v17 = vmov 0.0   ;;  %v2640_v18 = vld [vmem:[%s2953_s25] sm:$0xff]   ;;  %vm2766_vm1 = vmmov 0   ;;  %vm797_vm2 = vcmask 261120   ;;  %s3379_s23 = scalar_lea.vmem %s3317_s5, %s2939_s19  ;;  %s2767_s0 = smov 104   ;;  %v856_v32 = vlaneseq }
 0x172   : > { %2470 = vmatprep.subr.bf16.mxu0 %v2765_v17  ;;  %2478 = vmatprep.subr.bf16.mxu1 %v2765_v17  ;;  %v2393_v21 = vld [vmem:[%s3379_s23] ss:$0 sm:$0xff]  ;;  %s2768_s16 = smov 120   ;;  %s2769_s18 = smov 96   ;;  %v2771_v30 = vmov 1983009808  }
 0x173   : > { %2471 = vmatpush3.bf16.msra.mxu0 %v2639_v16  ;;  %2474 = vmatprep.mubr.msk.bf16.mxu0 %vm2766_vm1, %v2765_v17  ;;  %s2770_s28 = smov 112   ;;  %v854_v31 = vunpack.c.l.s4 %v2771_v30  ;;  %v857_v34 = vshrl.u32 %v856_v32, 7  ;;  %v2772_v35 = vmov 1934713408   ;;  %vm1298_vm3 = vcmask 64512   ;;  %s3380_s4 = sld [smem:[#allocation19_spill]] }
 0x174   : > { %2472 = vmatprep.subr.bf16.mxu0 %v2765_v17  ;;  %2480 = vmatprep.mubr.msk.bf16.mxu1 %vm2766_vm1, %v2765_v17  ;;  %v886_v36 = vunpack.c.l.s4 %v2772_v35  ;;  %vm1538_vm4 = vcmask 1043456   ;;  %s2775_s10 = smov 8   ;;  %s2776_s21 = smov 24   ;;  %vm1869_vm5 = vcmask 130048   ;;  %vm1871_vm6 = vcmask 195584  }
 0x175   : > { %v855_v33 = vunpack.c.0.s8 %v854_v31  ;;  %s3382_s25 = scalar_lea.vmem %s3319_s7, %s2939_s19  ;;  %vm2087_vm7 = vcmask 523264   ;;  %s3389_s17 = sld [smem:[#allocation8_spill]] }
 0x176   : > { %v887_v42 = vunpack.c.0.s8 %v886_v36 }
 0x177   : > { %v3023_v19 = vld [vmem:[#allocation2] sm:$0xff]  ;;  %2473 = vmatpush3.bf16.msra.mxu0 %v2640_v18  ;;  %v3058_v39 = vsub.s32 %v855_v33, %v857_v34 }
 0x178   : > { %v773_v20 = vpack.c.bf16 %v3023_v19, %v3023_v19  ;;  %2484 = vmatprep.subr.bf16.mxu0 %v2765_v17  ;;  %v3068_v49 = vsub.s32 %v887_v42, %v857_v34 }
 0x179   : > { %s3381_s6 = scalar_lea.vmem %s3380_s4, %s2936_s26  ;;  %s2773_s26 = smov 64  }
 0x17a   : > { %2475 = vmatmul.mubr.msk.bf16.vlgmr.msra.gmra.mxu0 %vm797_vm2, %v773_v20  ;;  %s3386_s4 = scalar_lea.vmem %s3323_s11, %s2939_s19 }
 0x17b   : > { %2486 = vmatprep.mubr.msk.bf16.mxu0 %vm2766_vm1, %v2765_v17  ;;  %p2432_p1 = scmp.ne.s32.totalorder %s3389_s17, 1 }
 0x23a   : > { %v835_v22 = vpop.f32.mrf.mxu0 }
 0x23b   : > { %v3039_v23 = vadd.f32 %v2393_v21, %v835_v22 }
 0x23c   : > { %v2476_v24 = vpop.f32.mrf.mxu0 }
 0x23d   : > { %848 = vrot.lane.b32.xlu1 %v3039_v23, %s2767_s0  ;;  %842 = vrot.lane.b32.xlu0 %v3039_v23, %s2768_s16  ;;  %s3383_s0 = scalar_lea.vmem %s3320_s8, %s2939_s19 }
 0x23e   : > { %v838_v25 = vpop.f32.mrf.mxu0 }
 0x240   : > { %v2477_v26 = vpop.f32.mrf.mxu0 }
 0x241   : > { %987 = vrot.lane.b32.xlu1 %v3039_v23, %s2769_s18  ;;  %845 = vrot.lane.b32.xlu0 %v3039_v23, %s2770_s28 }
 0x2af   : > { %v3045_v27 = vpop.permute.xlu0 %842  ;;  %v3048_v28 = vpop.permute.xlu1 %848 }
 0x2b0   : > { %989 = vrot.lane.b32.xlu0 %v3045_v27, %s2769_s18  ;;  %v867_v40 = vcombine.low %v3045_v27, %v3048_v28  ;;  %v868_v41 = vcombine.high %v3045_v27, %v3048_v28 }
 0x2b2   : > { %v875_v45 = vrot.slane %v867_v40, %v3058_v39  ;;  %v882_v46 = vrot.slane %v868_v41, %v3058_v39 }
 0x2b3   : > { %v3050_v29 = vpop.permute.xlu0 %845  ;;  %v988_v47 = vpop.permute.xlu1 %987 }
 0x2b4   : > { %993 = vrot.lane.b32.xlu0 %v3048_v28, %s2769_s18  ;;  %991 = vrot.lane.b32.xlu1 %v3050_v29, %s2769_s18  ;;  %v851_v37 = vcombine.low %v3039_v23, %v3050_v29  ;;  %v852_v38 = vcombine.high %v3039_v23, %v3050_v29 }
 0x2b6   : > { %v859_v43 = vrot.slane %v851_v37, %v3058_v39  ;;  %v866_v44 = vrot.slane %v852_v38, %v3058_v39 }
 0x2b8   : > { %v883_v50 = vcombine.low %v859_v43, %v875_v45  ;;  %v884_v51 = vcombine.high %v859_v43, %v875_v45  ;;  %v899_v52 = vcombine.low %v866_v44, %v882_v46  ;;  %v900_v53 = vcombine.high %v866_v44, %v882_v46 }
 0x2ba   : > { %v891_v60 = vrot.slane %v883_v50, %v3068_v49  ;;  %v898_v61 = vrot.slane %v884_v51, %v3068_v49  ;;  %v907_v62 = vrot.slane %v899_v52, %v3068_v49  ;;  %v914_v63 = vrot.slane %v900_v53, %v3068_v49 }
 0x2bc   : > { %v919_v8 = vcombine.low %v891_v60, %v898_v61  ;;  %v2397_v9 = vcombine.high %v891_v60, %v898_v61  ;;  %v935_v10 = vcombine.low %v907_v62, %v914_v63  ;;  %v2398_v11 = vcombine.high %v907_v62, %v914_v63 }
 0x2be   : > { %v926_v22 = vrot.slane %v919_v8, %v3058_v39  ;;  %v934_v24 = vrot.slane %v2397_v9, %v3058_v39  ;;  %v942_v25 = vrot.slane %v935_v10, %v3058_v39  ;;  %v950_v26 = vrot.slane %v2398_v11, %v3058_v39  ;;  %v2403_v8 = vld [vmem:[%s3381_s6] ss:$0 sm:$0xff] }
 0x2c0   : > { %v951_v41 = vcombine.low %v926_v22, %v934_v24  ;;  %v967_v42 = vcombine.low %v942_v25, %v950_v26 }
 0x2c2   : > { %v959_v50 = vrot.slane %v951_v41, %v3068_v49  ;;  %v975_v51 = vrot.slane %v967_v42, %v3068_v49 }
 0x322   : > { %v990_v48 = vpop.permute.xlu0 %989 }
 0x326   : > { %v992_v54 = vpop.permute.xlu1 %991  ;;  %v994_v55 = vpop.permute.xlu0 %993 }
 0x327   : > { %v999_v56 = vcombine.low %v988_v47, %v992_v54  ;;  %v1000_v57 = vcombine.high %v988_v47, %v992_v54  ;;  %v1015_v58 = vcombine.low %v990_v48, %v994_v55  ;;  %v1016_v59 = vcombine.high %v990_v48, %v994_v55 }
 0x329   : > { %v1007_v0 = vrot.slane %v999_v56, %v3058_v39  ;;  %v1014_v1 = vrot.slane %v1000_v57, %v3058_v39  ;;  %v1023_v2 = vrot.slane %v1015_v58, %v3058_v39  ;;  %v1030_v3 = vrot.slane %v1016_v59, %v3058_v39 }
 0x32a   : > { %v952_v56 = vcombine.high %v926_v22, %v934_v24  ;;  %v968_v57 = vcombine.high %v942_v25, %v950_v26  ;;  %v983_v58 = vcombine.low %v959_v50, %v975_v51  ;;  %v984_v59 = vcombine.high %v959_v50, %v975_v51 }
 0x32b   : > { %v1031_v4 = vcombine.low %v1007_v0, %v1023_v2  ;;  %v1032_v5 = vcombine.high %v1007_v0, %v1023_v2  ;;  %v1047_v6 = vcombine.low %v1014_v1, %v1030_v3  ;;  %v1048_v7 = vcombine.high %v1014_v1, %v1030_v3 }
 0x32c   : > { %v1283_v62 = vpack.c.bf16 %v983_v58, %v983_v58  ;;  %v1284_v63 = vpack.c.bf16 %v984_v59, %v984_v59  ;;  %v966_v0 = vrot.slane %v952_v56, %v3068_v49  ;;  %v982_v1 = vrot.slane %v968_v57, %v3068_v49 }
 0x32d   : > { %v1039_v12 = vrot.slane %v1031_v4, %v3068_v49  ;;  %v1046_v13 = vrot.slane %v1032_v5, %v3068_v49  ;;  %v1055_v14 = vrot.slane %v1047_v6, %v3068_v49  ;;  %v1062_v15 = vrot.slane %v1048_v7, %v3068_v49 }
 0x32e   : > { %v985_v4 = vcombine.low %v966_v0, %v982_v1  ;;  %v986_v5 = vcombine.high %v966_v0, %v982_v1 }
 0x32f   : > { %v1067_v16 = vcombine.low %v1039_v12, %v1046_v13  ;;  %v2399_v18 = vcombine.high %v1039_v12, %v1046_v13  ;;  %v1083_v20 = vcombine.low %v1055_v14, %v1062_v15  ;;  %v2400_v21 = vcombine.high %v1055_v14, %v1062_v15 }
 0x330   : > { %v1285_v6 = vpack.c.bf16 %v985_v4, %v985_v4  ;;  %v1286_v7 = vpack.c.bf16 %v986_v5, %v986_v5 }
 0x331   : > { %v1074_v30 = vrot.slane %v1067_v16, %v3058_v39  ;;  %v1082_v31 = vrot.slane %v2399_v18, %v3058_v39  ;;  %v1090_v32 = vrot.slane %v1083_v20, %v3058_v39  ;;  %v1098_v33 = vrot.slane %v2400_v21, %v3058_v39 }
 0x333   : > { %v1099_v34 = vcombine.low %v1074_v30, %v1082_v31  ;;  %v1115_v35 = vcombine.low %v1090_v32, %v1098_v33  ;;  %v1100_v36 = vcombine.high %v1074_v30, %v1082_v31  ;;  %v1116_v37 = vcombine.high %v1090_v32, %v1098_v33 }
 0x335   : > { %v1107_v38 = vrot.slane %v1099_v34, %v3068_v49  ;;  %v1123_v40 = vrot.slane %v1115_v35, %v3068_v49  ;;  %v1114_v45 = vrot.slane %v1100_v36, %v3068_v49  ;;  %v1130_v46 = vrot.slane %v1116_v37, %v3068_v49 }
 0x337   : > { %v1131_v43 = vcombine.low %v1107_v38, %v1123_v40  ;;  %v1132_v44 = vcombine.high %v1107_v38, %v1123_v40  ;;  %v1133_v54 = vcombine.low %v1114_v45, %v1130_v46  ;;  %v1134_v55 = vcombine.high %v1114_v45, %v1130_v46 }
 0x339   : > { %v1287_v47 = vpack.c.bf16 %v1131_v43, %v1131_v43  ;;  %v1288_v48 = vpack.c.bf16 %v1132_v44, %v1132_v44  ;;  %v1289_v60 = vpack.c.bf16 %v1133_v54, %v1133_v54  ;;  %v1290_v61 = vpack.c.bf16 %v1134_v55, %v1134_v55 }
 0x33b   : > { %v1303_v52 = vsel %vm1298_vm3, %v1287_v47, 0  ;;  %v1349_v53 = vsel %vm1298_vm3, %v1288_v48, 0  ;;  %v1395_v2 = vsel %vm1298_vm3, %v1289_v60, 0  ;;  %v1441_v3 = vsel %vm1298_vm3, %v1290_v61, 0 }
 0x33c   : > { %2479 = vmatpush3.bf16.xpose.msra.mxu1 %v1303_v52  ;;  %2485 = vmatpush3.bf16.xpose.msra.mxu0 %v1349_v53 }
 0x33d   : > { %2490 = vmatprep.subr.bf16.mxu1 %v2765_v17  ;;  %2496 = vmatprep.subr.bf16.mxu0 %v2765_v17 }
 0x343   : > { %2481 = vmatmul.mubr.msk.bf16.vlgmr.msra.gmra.mxu1 %vm1298_vm3, %v1283_v62  ;;  %2487 = vmatmul.mubr.msk.bf16.vlgmr.msra.gmra.mxu0 %vm1298_vm3, %v1284_v63 }
 0x344   : > { %2491 = vmatpush3.bf16.xpose.msra.mxu1 %v1395_v2  ;;  %2497 = vmatpush3.bf16.xpose.msra.mxu0 %v1441_v3 }
 0x345   : > { %2492 = vmatprep.mubr.msk.bf16.mxu1 %vm2766_vm1, %v2765_v17  ;;  %2498 = vmatprep.mubr.msk.bf16.mxu0 %vm2766_vm1, %v2765_v17 }
 0x346   : > { %2502 = vmatprep.subr.bf16.mxu1 %v2765_v17  ;;  %2508 = vmatprep.subr.bf16.mxu0 %v2765_v17 }
 0x34b   : > { %2493 = vmatmul.mubr.msk.bf16.vlgmr.msra.gmra.mxu1 %vm1298_vm3, %v1285_v6  ;;  %2499 = vmatmul.mubr.msk.bf16.vlgmr.msra.gmra.mxu0 %vm1298_vm3, %v1286_v7 }
 0x34c   : > { %2504 = vmatprep.mubr.msk.bf16.mxu1 %vm2766_vm1, %v2765_v17  ;;  %2510 = vmatprep.mubr.msk.bf16.mxu0 %vm2766_vm1, %v2765_v17 }
 0x403   : > { %v1339_v9 = vpop.f32.mrf.mxu1  ;;  %v1385_v10 = vpop.f32.mrf.mxu0 }
 0x404   : > { %v1340_v11 = vadd.f32 %v2403_v8, %v1339_v9  ;;  %v1386_v12 = vadd.f32 %v2403_v8, %v1385_v10 }
 0x405   : > { %v2482_v13 = vpop.f32.mrf.mxu1  ;;  %v2488_v14 = vpop.f32.mrf.mxu0 }
 0x406   : > { %v1483_v15 = vsel %vm1298_vm3, %v1340_v11, -inf  ;;  %v1486_v16 = vsel %vm1298_vm3, %v1386_v12, -inf }
 0x407   : > { %1484 = vmax.xlane.f32.xlu1 %v1483_v15  ;;  %v1342_v18 = vpop.f32.mrf.mxu1  ;;  %1487 = vmax.xlane.f32.xlu0 %v1486_v16  ;;  %v1388_v20 = vpop.f32.mrf.mxu0 }
 0x409   : > { %v2483_v21 = vpop.f32.mrf.mxu1  ;;  %v2489_v22 = vpop.f32.mrf.mxu0 }
 0x40b   : > { %v1431_v24 = vpop.f32.mrf.mxu1  ;;  %v1477_v25 = vpop.f32.mrf.mxu0 }
 0x40c   : > { %v1432_v26 = vadd.f32 %v2403_v8, %v1431_v24  ;;  %v1478_v30 = vadd.f32 %v2403_v8, %v1477_v25 }
 0x40d   : > { %v2494_v31 = vpop.f32.mrf.mxu1  ;;  %v2500_v32 = vpop.f32.mrf.mxu0 }
 0x40e   : > { %v1489_v33 = vsel %vm1298_vm3, %v1432_v26, -inf  ;;  %v1492_v34 = vsel %vm1298_vm3, %v1478_v30, -inf }
 0x40f   : > { %v1434_v35 = vpop.f32.mrf.mxu1  ;;  %1490 = vmax.xlane.f32.xlu0 %v1489_v33  ;;  %1493 = vmax.xlane.f32.xlu1 %v1492_v34  ;;  %v1480_v36 = vpop.f32.mrf.mxu0 }
 0x411   : > { %v2495_v37 = vpop.f32.mrf.mxu1  ;;  %v2501_v38 = vpop.f32.mrf.mxu0 }
 0x420   : > { %1137 = vrot.lane.b32.xlu1 %v3045_v27, %s2773_s26 }
 0x425   : > { %1135 = vrot.lane.b32.xlu0 %v3039_v23, %s2773_s26 }
 0x490   : > { %v1485_v40 = vpop.xlane.xlu1 %1484  ;;  %v1488_v41 = vpop.xlane.xlu0 %1487 }
 0x491   : > { %v1495_v42 = vsub.f32 %v1340_v11, %v1485_v40  ;;  %v1496_v43 = vsub.f32 %v1386_v12, %v1488_v41 }
 0x493   : > { %v1499_v44 = vmul.f32 1.442695, %v1495_v42  ;;  %v1501_v45 = vmul.f32 1.442695, %v1496_v43 }
 0x495   : > { %2649 = vpow2.f32 %v1499_v44 }
 0x496   : > { %2651 = vpow2.f32 %v1501_v45 }
 0x498   : > { %v1494_v23 = vpop.xlane.xlu1 %1493  ;;  %v1491_v50 = vpop.xlane.xlu0 %1490 }
 0x499   : > { %v1498_v51 = vsub.f32 %v1478_v30, %v1494_v23  ;;  %v1497_v52 = vsub.f32 %v1432_v26, %v1491_v50 }
 0x49b   : > { %v1505_v53 = vmul.f32 1.442695, %v1498_v51  ;;  %v1503_v54 = vmul.f32 1.442695, %v1497_v52 }
 0x49c   : > { %v1138_v58 = vpop.permute.xlu1 %1137 }
 0x49d   : > { %2653 = vpow2.f32 %v1505_v53 }
 0x49e   : > { %2655 = vpow2.f32 %v1503_v54 }
 0x4a2   : > { %v3129_v46 = vpop.eup %2649 }
 0x4a3   : > { %v3131_v47 = vpop.eup %2651  ;;  %v1507_v48 = vsel %vm1298_vm3, %v3129_v46, 0.0 }
 0x4a4   : > { %1508 = vadd.xlane.f32.xlu0 %v1507_v48  ;;  %v1510_v27 = vsel %vm1298_vm3, %v3131_v47, 0.0 }
 0x4a5   : > { %1511 = vadd.xlane.f32.xlu1 %v1510_v27 }
 0x4aa   : > { %v3139_v55 = vpop.eup %2653 }
 0x4ab   : > { %v3141_v56 = vpop.eup %2655  ;;  %v1516_v57 = vsel %vm1298_vm3, %v3139_v55, 0.0 }
 0x4b6   : > { %1139 = vrot.lane.b32.xlu1 %v3050_v29, %s2773_s26  ;;  %v1513_v29 = vsel %vm1298_vm3, %v3141_v56, 0.0 }
 0x4ba   : > { %1141 = vrot.lane.b32.xlu0 %v3048_v28, %s2773_s26  ;;  %v1136_v28 = vpop.permute.xlu0 %1135 }
 0x4d9   : > { %1517 = vadd.xlane.f32.xlu0 %v1516_v57 }
 0x4da   : > { %1514 = vadd.xlane.f32.xlu1 %v1513_v29 }
 0x52d   : > { %v1509_v59 = vpop.xlane.xlu0 %1508 }
 0x52e   : > { %v1512_v60 = vpop.xlane.xlu1 %1511  ;;  %2657 = vrcp.f32 %v1509_v59 }
 0x52f   : > { %2659 = vrcp.f32 %v1512_v60 }
 0x531   : > { %v1142_v61 = vpop.permute.xlu0 %1141 }
 0x532   : > { %v1163_v62 = vcombine.low %v1138_v58, %v1142_v61  ;;  %v1164_v63 = vcombine.high %v1138_v58, %v1142_v61  ;;  %v1140_v0 = vpop.permute.xlu1 %1139 }
 0x533   : > { %v1147_v1 = vcombine.low %v1136_v28, %v1140_v0  ;;  %v1148_v2 = vcombine.high %v1136_v28, %v1140_v0 }
 0x534   : > { %v1171_v3 = vrot.slane %v1163_v62, %v3058_v39  ;;  %v1178_v4 = vrot.slane %v1164_v63, %v3058_v39 }
 0x535   : > { %v1155_v5 = vrot.slane %v1147_v1, %v3058_v39  ;;  %v1162_v6 = vrot.slane %v1148_v2, %v3058_v39 }
 0x537   : > { %v1179_v7 = vcombine.low %v1155_v5, %v1171_v3  ;;  %v1180_v8 = vcombine.high %v1155_v5, %v1171_v3  ;;  %v1195_v9 = vcombine.low %v1162_v6, %v1178_v4  ;;  %v1196_v10 = vcombine.high %v1162_v6, %v1178_v4 }
 0x539   : > { %v1187_v11 = vrot.slane %v1179_v7, %v3068_v49  ;;  %v1194_v12 = vrot.slane %v1180_v8, %v3068_v49  ;;  %v1203_v13 = vrot.slane %v1195_v9, %v3068_v49  ;;  %v1210_v14 = vrot.slane %v1196_v10, %v3068_v49 }
 0x53b   : > { %v1215_v15 = vcombine.low %v1187_v11, %v1194_v12  ;;  %v2401_v16 = vcombine.high %v1187_v11, %v1194_v12  ;;  %v1231_v18 = vcombine.low %v1203_v13, %v1210_v14  ;;  %v2402_v20 = vcombine.high %v1203_v13, %v1210_v14  ;;  %v2658_v33 = vpop.eup %2657 }
 0x53c   : > { %v2660_v38 = vpop.eup %2659  ;;  %v1523_v48 = vmul.f32 %v2658_v33, %v3129_v46 }
 0x53d   : > { %v1222_v21 = vrot.slane %v1215_v15, %v3058_v39  ;;  %v1230_v22 = vrot.slane %v2401_v16, %v3058_v39  ;;  %v1238_v24 = vrot.slane %v1231_v18, %v3058_v39  ;;  %v1246_v25 = vrot.slane %v2402_v20, %v3058_v39 }
 0x53e   : > { %v1524_v27 = vmul.f32 %v2660_v38, %v3131_v47  ;;  %v1527_v53 = vpack.c.bf16 %v1523_v48, %v1523_v48 }
 0x53f   : > { %v1247_v26 = vcombine.low %v1222_v21, %v1230_v22  ;;  %v1263_v30 = vcombine.low %v1238_v24, %v1246_v25  ;;  %v1248_v31 = vcombine.high %v1222_v21, %v1230_v22  ;;  %v1264_v32 = vcombine.high %v1238_v24, %v1246_v25 }
 0x540   : > { %v1528_v54 = vpack.c.bf16 %v1524_v27, %v1524_v27 }
 0x541   : > { %v1255_v34 = vrot.slane %v1247_v26, %v3068_v49  ;;  %v1271_v35 = vrot.slane %v1263_v30, %v3068_v49  ;;  %v1262_v36 = vrot.slane %v1248_v31, %v3068_v49  ;;  %v1278_v37 = vrot.slane %v1264_v32, %v3068_v49  ;;  %v2641_v30 = vld [vmem:[%s2962_s30 + $0x8] sm:$0xff]  }
 0x543   : > { %v1279_v40 = vcombine.low %v1255_v34, %v1271_v35  ;;  %v1280_v41 = vcombine.high %v1255_v34, %v1271_v35  ;;  %v1281_v42 = vcombine.low %v1262_v36, %v1278_v37  ;;  %v1282_v43 = vcombine.high %v1262_v36, %v1278_v37 }
 0x545   : > { %v1531_v44 = vpack.c.bf16 %v1279_v40, %v1279_v40  ;;  %v1532_v45 = vpack.c.bf16 %v1280_v41, %v1280_v41  ;;  %v1533_v51 = vpack.c.bf16 %v1281_v42, %v1281_v42  ;;  %v1534_v52 = vpack.c.bf16 %v1282_v43, %v1282_v43  ;;  %v2642_v41 = vld [vmem:[%s2962_s30] sm:$0xff]   ;;  %s2774_s30 = smov 16  }
 0x547   : > { %v1540_v23 = vsel %vm1538_vm4, %v1531_v44, 0  ;;  %v1586_v50 = vsel %vm1538_vm4, %v1532_v45, 0  ;;  %v1632_v46 = vsel %vm1538_vm4, %v1533_v51, 0  ;;  %v1678_v47 = vsel %vm1538_vm4, %v1534_v52, 0 }
 0x548   : > { %2503 = vmatpush3.bf16.msra.mxu1 %v1540_v23  ;;  %2509 = vmatpush3.bf16.msra.mxu0 %v1586_v50 }
 0x549   : > { %2514 = vmatprep.subr.bf16.mxu1 %v2765_v17  ;;  %2520 = vmatprep.subr.bf16.mxu0 %v2765_v17 }
 0x54b   : > { %2505 = vmatmul.mubr.msk.bf16.vlgmr.msra.gmra.mxu1 %vm1298_vm3, %v1527_v53  ;;  %2511 = vmatmul.mubr.msk.bf16.vlgmr.msra.gmra.mxu0 %vm1298_vm3, %v1528_v54 }
 0x54c   : > { %2515 = vmatpush3.bf16.msra.mxu1 %v1632_v46  ;;  %2521 = vmatpush3.bf16.msra.mxu0 %v1678_v47 }
 0x54d   : > { %2516 = vmatprep.mubr.msk.bf16.mxu1 %vm2766_vm1, %v2765_v17  ;;  %2522 = vmatprep.mubr.msk.bf16.mxu0 %vm2766_vm1, %v2765_v17 }
 0x54e   : > { %2526 = vmatprep.subr.bf16.mxu1 %v2765_v17  ;;  %2534 = vmatprep.subr.bf16.mxu0 %v2765_v17 }
 0x562   : > { %v1518_v57 = vpop.xlane.xlu0 %1517 }
 0x563   : > { %2661 = vrcp.f32 %v1518_v57  ;;  %v1515_v29 = vpop.xlane.xlu1 %1514 }
 0x564   : > { %2663 = vrcp.f32 %v1515_v29 }
 0x570   : > { %v2662_v28 = vpop.eup %2661 }
 0x571   : > { %v2664_v58 = vpop.eup %2663  ;;  %v1526_v59 = vmul.f32 %v2662_v28, %v3139_v55 }
 0x572   : > { %v1525_v60 = vmul.f32 %v2664_v58, %v3141_v56 }
 0x573   : > { %v1530_v61 = vpack.c.bf16 %v1526_v59, %v1526_v59 }
 0x574   : > { %v1529_v62 = vpack.c.bf16 %v1525_v60, %v1525_v60 }
 0x575   : > { %2523 = vmatmul.mubr.msk.bf16.vlgmr.msra.gmra.mxu0 %vm1298_vm3, %v1530_v61 }
 0x576   : > { %2517 = vmatmul.mubr.msk.bf16.vlgmr.msra.gmra.mxu1 %vm1298_vm3, %v1529_v62  ;;  %2538 = vmatprep.mubr.msk.bf16.mxu0 %vm2766_vm1, %v2765_v17  ;;  %v2414_v62 = vld [vmem:[%s3382_s25] ss:$0 sm:$0xff] }
 0x577   : > { %2530 = vmatprep.mubr.msk.bf16.mxu1 %vm2766_vm1, %v2765_v17  ;;  %2527 = vmatpush3.bf16.msra.mxu1 %v2641_v30  ;;  %v2420_v30 = vld [vmem:[%s3386_s4] ss:$0 sm:$0xff] }
 0x578   : > { %2528 = vmatprep.subr.bf16.mxu1 %v2765_v17 }
 0x57b   : > { %2529 = vmatpush3.bf16.msra.mxu1 %v2642_v41 }
 0x57c   : > { %2542 = vmatprep.subr.bf16.mxu1 %v2765_v17 }
 0x60b   : > { %v1576_v63 = vpop.f32.mrf.mxu1  ;;  %v1622_v0 = vpop.f32.mrf.mxu0 }
 0x60d   : > { %v2506_v1 = vpop.f32.mrf.mxu1  ;;  %v2512_v2 = vpop.f32.mrf.mxu0 }
 0x60f   : > { %v1579_v3 = vpop.f32.mrf.mxu1  ;;  %v1625_v55 = vpop.f32.mrf.mxu0 }
 0x611   : > { %v2507_v4 = vpop.f32.mrf.mxu1  ;;  %v2513_v56 = vpop.f32.mrf.mxu0 }
 0x635   : > { %v1714_v5 = vpop.f32.mrf.mxu0 }
 0x636   : > { %v1668_v6 = vpop.f32.mrf.mxu1  ;;  %v1736_v7 = vcombine.low %v1622_v0, %v1714_v5  ;;  %v1737_v8 = vcombine.high %v1622_v0, %v1714_v5 }
 0x637   : > { %v1720_v9 = vcombine.low %v1576_v63, %v1668_v6  ;;  %v1721_v10 = vcombine.high %v1576_v63, %v1668_v6  ;;  %v2524_v11 = vpop.f32.mrf.mxu0 }
 0x638   : > { %v1744_v12 = vrot.slane %v1736_v7, %v3058_v39  ;;  %v1751_v13 = vrot.slane %v1737_v8, %v3058_v39  ;;  %v2518_v14 = vpop.f32.mrf.mxu1 }
 0x639   : > { %v1728_v15 = vrot.slane %v1720_v9, %v3058_v39  ;;  %v1735_v16 = vrot.slane %v1721_v10, %v3058_v39  ;;  %v1717_v18 = vpop.f32.mrf.mxu0  ;;  %v2643_v9 = vld [vmem:[%s2979_s3 + $0x8] sm:$0xff]   ;;  %v2644_v10 = vld [vmem:[%s2979_s3] sm:$0xff]   ;;  %s3384_s3 = sld [smem:[#allocation24_spill]] }
 0x63a   : > { %v1671_v20 = vpop.f32.mrf.mxu1  ;;  %2535 = vmatpush3.bf16.msra.mxu0 %v2643_v9  ;;  %v2418_v14 = vld [vmem:[%s3383_s0] ss:$0 sm:$0xff] }
 0x63b   : > { %v1752_v21 = vcombine.low %v1728_v15, %v1744_v12  ;;  %v1753_v22 = vcombine.high %v1728_v15, %v1744_v12  ;;  %v1768_v24 = vcombine.low %v1735_v16, %v1751_v13  ;;  %v1769_v25 = vcombine.high %v1735_v16, %v1751_v13  ;;  %v2525_v26 = vpop.f32.mrf.mxu0  ;;  %2536 = vmatprep.subr.bf16.mxu0 %v2765_v17 }
 0x63c   : > { %v2519_v31 = vpop.f32.mrf.mxu1  ;;  %v2648_v26 = vld [vmem:[%s2993_s20] sm:$0xff]  }
 0x63d   : > { %v1760_v32 = vrot.slane %v1752_v21, %v3068_v49  ;;  %v1767_v33 = vrot.slane %v1753_v22, %v3068_v49  ;;  %v1776_v34 = vrot.slane %v1768_v24, %v3068_v49  ;;  %v1783_v35 = vrot.slane %v1769_v25, %v3068_v49  ;;  %v2645_v22 = vld [vmem:[%s2993_s20 + $0x18] sm:$0xff]   ;;  %v2646_v24 = vld [vmem:[%s2993_s20 + $0x10] sm:$0xff]   ;;  %v2647_v25 = vld [vmem:[%s2993_s20 + $0x8] sm:$0xff]  }
 0x63e   : > { %2537 = vmatpush3.bf16.msra.mxu0 %v2644_v10 }
 0x63f   : > { %v1788_v36 = vcombine.low %v1760_v32, %v1767_v33  ;;  %v2412_v37 = vcombine.high %v1760_v32, %v1767_v33  ;;  %v1804_v38 = vcombine.low %v1776_v34, %v1783_v35  ;;  %v2413_v40 = vcombine.high %v1776_v34, %v1783_v35  ;;  %s3385_s28 = scalar_lea.vmem %s3384_s3, %s2939_s19 }
 0x640   : > { %v2419_v16 = vld [vmem:[%s3385_s28] ss:$0 sm:$0xff] }
 0x641   : > { %v1795_v42 = vrot.slane %v1788_v36, %v3058_v39  ;;  %v1803_v43 = vrot.slane %v2412_v37, %v3058_v39  ;;  %v1811_v44 = vrot.slane %v1804_v38, %v3058_v39  ;;  %v1819_v45 = vrot.slane %v2413_v40, %v3058_v39 }
 0x643   : > { %v1821_v48 = vcombine.high %v1795_v42, %v1803_v43  ;;  %v1837_v27 = vcombine.high %v1811_v44, %v1819_v45  ;;  %v1820_v23 = vcombine.low %v1795_v42, %v1803_v43  ;;  %v1836_v50 = vcombine.low %v1811_v44, %v1819_v45 }
 0x645   : > { %v1835_v51 = vrot.slane %v1821_v48, %v3068_v49  ;;  %v1851_v52 = vrot.slane %v1837_v27, %v3068_v49  ;;  %v1828_v53 = vrot.slane %v1820_v23, %v3068_v49  ;;  %v1844_v54 = vrot.slane %v1836_v50, %v3068_v49  ;;  %v2424_v48 = vld [vmem:[%s727_s27] ss:$0 sm:$0xff] }
 0x647   : > { %v1854_v46 = vcombine.low %v1835_v51, %v1851_v52  ;;  %v1853_v47 = vcombine.high %v1828_v53, %v1844_v54  ;;  %v1852_v57 = vcombine.low %v1828_v53, %v1844_v54  ;;  %v1855_v39 = vcombine.high %v1835_v51, %v1851_v52 }
 0x649   : > { %1861 = vrot.lane.b32.xlu1 %v1854_v46, %s2774_s30  ;;  %1857 = vrot.lane.b32.xlu0 %v1853_v47, %s2775_s10 }
 0x64d   : > { %1865 = vrot.lane.b32.xlu1 %v1855_v39, %s2776_s21 }
 0x6bb   : > { %v1862_v29 = vpop.permute.xlu1 %1861  ;;  %v1858_v28 = vpop.permute.xlu0 %1857 }
 0x6bc   : > { %v1868_v58 = vsel %vm1298_vm3, %v1852_v57, %v1858_v28 }
 0x6bd   : > { %v1870_v60 = vsel %vm1869_vm5, %v1868_v58, %v1862_v29 }
 0x6bf   : > { %v1866_v59 = vpop.permute.xlu1 %1865 }
 0x6c0   : > { %v1872_v49 = vsel %vm1871_vm6, %v1870_v60, %v1866_v59 }
 0x6c1   : > { %v1873_v61 = vpack.c.bf16 %v1872_v49, %v1872_v49  ;;  %v2430_v49 = vld [vmem:[%s730_s1] ss:$0 sm:$0xff] }
 0x6c3   : > { %2531 = vmatmul.mubr.msk.bf16.vlgmr.msra.gmra.mxu1 %vm797_vm2, %v1873_v61 }
 0x6c4   : > { %2550 = vmatprep.mubr.msk.bf16.mxu1 %vm2766_vm1, %v2765_v17  ;;  %2543 = vmatpush3.bf16.msra.mxu1 %v2645_v22 }
 0x6c5   : > { %2544 = vmatprep.subr.bf16.mxu1 %v2765_v17 }
 0x6c8   : > { %2545 = vmatpush3.bf16.msra.mxu1 %v2646_v24 }
 0x6c9   : > { %2546 = vmatprep.subr.bf16.mxu1 %v2765_v17 }
 0x6cc   : > { %2547 = vmatpush3.bf16.msra.mxu1 %v2647_v25 }
 0x6cd   : > { %2548 = vmatprep.subr.bf16.mxu1 %v2765_v17 }
 0x6d0   : > { %2549 = vmatpush3.bf16.msra.mxu1 %v2648_v26 }
 0x783   : > { %v1934_v63 = vpop.f32.mrf.mxu1 }
 0x784   : > { %v1935_v0 = vadd.f32 %v2414_v62, %v1934_v63  ;;  %v2431_v62 = vld [vmem:[%s733_s9] ss:$0 sm:$0xff] }
 0x785   : > { %v2532_v1 = vpop.f32.mrf.mxu1 }
 0x786   : > { %v1940_v2 = vadd.f32 %v1935_v0, %v3023_v19 }
 0x787   : > { %v1937_v3 = vpop.f32.mrf.mxu1 }
 0x788   : > { %v1943_v55 = vsel %vm797_vm2, %v1940_v2, 0.0 }
 0x789   : > { %1944 = vadd.xlane.f32.xlu0 %v1943_v55  ;;  %v2533_v4 = vpop.f32.mrf.mxu1 }
 0x812   : > { %v1945_v56 = vpop.xlane.xlu0 %1944 }
 0x813   : > { %v1947_v5 = vmul.f32 0.03125, %v1945_v56 }
 0x815   : > { %v1948_v6 = vsub.f32 %v1940_v2, %v1947_v5 }
 0x817   : > { %v1949_v7 = vmul.f32 %v1948_v6, %v1948_v6 }
 0x819   : > { %v1950_v8 = vsel %vm797_vm2, %v1949_v7, 0.0 }
 0x81a   : > { %1951 = vadd.xlane.f32.xlu1 %v1950_v8 }
 0x8a3   : > { %v1952_v19 = vpop.xlane.xlu1 %1951 }
 0x8a4   : > { %v1953_v11 = vmul.f32 0.03125, %v1952_v19 }
 0x8a6   : > { %v1954_v12 = vadd.f32 1e-12, %v1953_v11 }
 0x8a8   : > { %2665 = vrsqrt.f32 %v1954_v12 }
 0x8b5   : > { %v2666_v13 = vpop.eup %2665 }
 0x8b6   : > { %v1956_v15 = vmul.f32 %v2666_v13, %v1948_v6 }
 0x8b8   : > { %v1963_v18 = vmul.f32 %v2418_v14, %v1956_v15 }
 0x8ba   : > { %v1970_v20 = vadd.f32 %v2419_v16, %v1963_v18 }
 0x8bc   : > { %v1971_v21 = vpack.c.bf16 %v1970_v20, %v1970_v20 }
 0x8be   : > { %2539 = vmatmul.mubr.msk.bf16.vlgmr.msra.gmra.mxu0 %vm797_vm2, %v1971_v21 }
 0x97e   : > { %v2032_v31 = vpop.f32.mrf.mxu0 }
 0x97f   : > { %v2033_v32 = vadd.f32 %v2420_v30, %v2032_v31 }
 0x980   : > { %v2540_v33 = vpop.f32.mrf.mxu0 }
 0x981   : > { %v2039_v34 = vmul.f32 0.044715, %v2033_v32  ;;  %v2038_v17 = vmul.f32 0.5, %v2033_v32 }
 0x982   : > { %v2035_v35 = vpop.f32.mrf.mxu0 }
 0x983   : > { %v2040_v36 = vmul.f32 %v2039_v34, %v2033_v32 }
 0x984   : > { %v2541_v37 = vpop.f32.mrf.mxu0 }
 0x985   : > { %v2041_v38 = vmul.f32 %v2040_v36, %v2033_v32 }
 0x987   : > { %v2042_v40 = vadd.f32 %v2041_v38, %v2033_v32 }
 0x989   : > { %v2043_v41 = vmul.f32 0.7978846, %v2042_v40 }
 0x98b   : > { %2667 = vtanh.f32 %v2043_v41 }
 0x998   : > { %v2668_v42 = vpop.eup %2667 }
 0x999   : > { %v2045_v43 = vadd.f32 1.0, %v2668_v42 }
 0x99b   : > { %v2046_v44 = vmul.f32 %v2045_v43, %v2038_v17 }
 0x99d   : > { %v2047_v45 = vpack.c.bf16 %v2046_v44, %v2046_v44 }
 0x99f   : > { %2551 = vmatmul.mubr.msk.bf16.vlgmr.msra.gmra.mxu1 %vm2087_vm7, %v2047_v45 }
 0xa5f   : > { %v2125_v27 = vpop.f32.mrf.mxu1 }
 0xa60   : > { %v2126_v23 = vadd.f32 %v2424_v48, %v2125_v27 }
 0xa61   : > { %v2552_v50 = vpop.f32.mrf.mxu1 }
 0xa62   : > { %v2131_v51 = vadd.f32 %v2126_v23, %v1970_v20 }
 0xa63   : > { %v2128_v52 = vpop.f32.mrf.mxu1 }
 0xa64   : > { %v2134_v53 = vsel %vm797_vm2, %v2131_v51, 0.0 }
 0xa65   : > { %2135 = vadd.xlane.f32.xlu0 %v2134_v53  ;;  %v2553_v54 = vpop.f32.mrf.mxu1 }
 0xaee   : > { %v2136_v46 = vpop.xlane.xlu0 %2135 }
 0xaef   : > { %v2137_v47 = vmul.f32 0.03125, %v2136_v46 }
 0xaf1   : > { %v2138_v57 = vsub.f32 %v2131_v51, %v2137_v47 }
 0xaf3   : > { %v2139_v39 = vmul.f32 %v2138_v57, %v2138_v57 }
 0xaf5   : > { %v2140_v29 = vsel %vm797_vm2, %v2139_v39, 0.0 }
 0xaf6   : > { %2141 = vadd.xlane.f32.xlu0 %v2140_v29 }
 0xb7f   : > { %v2142_v28 = vpop.xlane.xlu0 %2141 }
 0xb80   : > { %v2143_v58 = vmul.f32 0.03125, %v2142_v28 }
 0xb82   : > { %v2144_v59 = vadd.f32 1e-12, %v2143_v58 }
 0xb84   : > { %2669 = vrsqrt.f32 %v2144_v59 }
 0xb91   : > { %v2670_v60 = vpop.eup %2669 }
 0xb92   : > { %v2146_v61 = vmul.f32 %v2670_v60, %v2138_v57 }
 0xb94   : > { %v2153_v63 = vmul.f32 %v2430_v49, %v2146_v61  ;;  %2165 = sbr.rel (%p2432_p1) target bundleno = 2971 (0xb9b), region = 92 }
 0xb96   : > { %v2160_v0 = vadd.f32 %v2431_v62, %v2153_v63 }
 0xb98   : > { %2161 = vst.msk [vmem:[#allocation2] sm:$0xff] %vm797_vm2, %v2160_v0 }
 0xb99   : > { %vm2166_vm8 = vcmask 253952  }
 0xb9a   : > { %2167 = vst.msk [vmem:[%s3005_s15] sm:$0x1] %vm2166_vm8, %v2160_v0 }
 0xb9b PF: > { %s3390_s25 = sld [smem:[#allocation9_spill]]  ;;  %s2181_s16 = sshll.u32 %s3005_s15, 4  ;;  %s2182_s16 = int_to_ptr.vmem [resolvable:$true] %s2181_s16 }
 0xb9c   : > { %s3392_s19 = sld [smem:[#allocation28_spill]]  ;;  %s3393_s18 = sand.u32 1, %s2739_s22  }
 0xb9d   : > { %s2169_s3 = scalar_lea.sflag [#allocation4], %s3393_s18  ;;  %s2671_s28 = scalar_lea.vmem %s2182_s16, 16 }
 0xb9e   : > { %p2672_p2 = scmp.ne.s32.totalorder %s2182_s16, %s2671_s28  ;;  %s2777_s2 = smov [#allocation3]  }
 0xb9f   : > { %s2675_s14 = sshll.u32 %s2777_s2, 4  ;;  %s2676_s14 = int_to_ptr.vmem [resolvable:$false] %s2675_s14 }
 0xba0   : > { %p2673_p4 = pnand %p2672_p2, %p2912_p3  ;;  %s2677_s4 = scalar_lea.vmem %s2676_s14, 32 }
 0xba1   : > { %s2433_s29 = sshll.u32 %s3390_s25, 4  ;;  %p2678_p6 = scmp.lt.s32.totalorder %s2182_s16, %s2676_s14 }
 0xba2   : > { %s2179_s9 = scalar_lea.hbm %s3392_s19, %s2433_s29  ;;  %p2674_p5 = pneg %p2673_p4 }
 0xba3   : > { %p2679_p7 = scmp.lt.s32.totalorder %s2677_s4, %s2671_s28 }
 0xba5   : > { %p2680_p8 = por %p2679_p7, %p2678_p6 }
 0xba7   : > { %p2681_p10 = pnand %p2680_p8, %p2674_p5 }
 0xba9   : > { %2684 = shalt.err (!%p2681_p10)
}
 0xbaa   : > { %s2685_s20 = scalar_lea.hbm %s2179_s9, 16  ;;  %s2689_s27 = scalar_lea.hbm %s3392_s19, 32 }
 0xbab   : > { %p2686_p11 = scmp.ne.s32.totalorder %s2179_s9, %s2685_s20  ;;  %p2690_p0 = scmp.lt.s32.totalorder %s2179_s9, %s3392_s19 }
 0xbac   : > { %p2691_p1 = scmp.lt.s32.totalorder %s2689_s27, %s2685_s20 }
 0xbad   : > { %p2687_p12 = pnand %p2686_p11, %p2912_p3 }
 0xbae   : > { %p2692_p2 = por %p2691_p1, %p2690_p0 }
 0xbaf   : > { %p2688_p13 = pneg %p2687_p12 }
 0xbb1   : > { %p2693_p4 = pnand %p2692_p2, %p2688_p13 }
 0xbb3   : > { %2696 = shalt.err (!%p2693_p4)
}
 0xbb4   : > { %2554 = dma.vmem_to_hbm [thread:$0]  (%p2912_p3), %s2182_s16, 16, %s2179_s9, %s2169_s3  }
 0xbb5 PF: > { %s3394_s10 = sld [smem:[#allocation12_spill]] }
 0xbb6   : > { %s3395_s21 = sld [smem:[#allocation6_spill]] }
 0xbbb   : > { %p2560_p5 = scmp.ge.s32.totalorder %s3394_s10, 2 }
 0xbbc   : > { %s2193_s17 = sand.u32 1, %s3395_s21  }
 0xbbd   : > { %p2557_p6 = pnand %p2560_p5, %p2922_p9  ;;  %s2194_s25 = scalar_lea.sflag [#allocation4], %s2193_s17 }
 0xbbf   : > { %p2558_p7 = pneg %p2557_p6 }
 0xbc1   : > { %2730 = dma.done.wait (%p2558_p7), %s2194_s25, 16  }
 0xbc2   : > { %2732 = vsyncadd (%p2558_p7), %s2194_s25, 4294967280  ;;  %s29_s28 = sadd.s32 1, %s3394_s10   ;;  %s3397_s29 = sld [smem:[#allocation7_spill]] }
 0xbc3   : > { %p26_p8 = scmp.ge.s32.totalorder %s29_s28, 6   ;;  %s3398_s23 = sld [smem:[#allocation17_spill]] }
 0xbc4   : > { %s3399_s24 = sld [smem:[#allocation10_spill]]  ;;  %s3403_s21 = smov %s2739_s22 }
 0xbc5   : > { %s3400_s25 = sld [smem:[#allocation11_spill]]  ;;  %28 = sbr.rel (!%p26_p8) target bundleno = 17 (0x11), region = 166 }
 0xbc6   : > { %s3401_s26 = sld [smem:[#allocation13_spill]] }
 0xbc7   : > { %s3402_s27 = sld [smem:[#allocation15_spill]] }
 0xbc8   : > { %s3404_s22 = smov %s3397_s29 }
 0xbca   :  { %2198 = vsyncpa [#allocation4], 1 }
 0xbcb   :  { %2200 = vsyncpa [#allocation4 + $0x1], 1 }

</bundles_post_ra>
